<compile_context>
chip_gen: v7x
topology: tpu7x:2x2x1
jax: 0.10.0
libtpu: 0.0.40
codegen_flags: <defaults>
</compile_context>

<pallas_src>
import functools

import numpy as np
import jax
import jax.numpy as jnp
from jax import lax
from jax.experimental import pallas as pl
from jax.experimental.pallas import tpu as pltpu

# Reduced STFT config (PyTorch default is 1024/4/1024; identical math, hop kept at 128 so every
# lane dimension inside the kernel is a multiple of 128).
FILTER_LENGTH = 512
N_OVERLAP = 4
HOP_LENGTH = FILTER_LENGTH // N_OVERLAP            # 128
WIN_LENGTH = FILTER_LENGTH
CUTOFF = FILTER_LENGTH // 2 + 1                    # 257
CUTOFF_PAD = ((CUTOFF + 127) // 128) * 128         # 384 (lane-aligned real/imag split)


# ----------------------------------------------------------------------------- STFT setup glue
def _hann_periodic(n):
    k = np.arange(n)
    return 0.5 - 0.5 * np.cos(2.0 * np.pi * k / n)


def make_stft_bases():
    L, hop, C = FILTER_LENGTH, HOP_LENGTH, CUTOFF
    scale = L / hop
    fourier = np.fft.fft(np.eye(L))
    fb = np.vstack([np.real(fourier[:C, :]), np.imag(fourier[:C, :])])  # (2C, L)
    window = _hann_periodic(WIN_LENGTH)  # win_length == filter_length -> no pad_center needed
    forward_basis = (fb * window[None, :]).astype(np.float32)                             # (2C, L)
    inverse_basis = (np.linalg.pinv(scale * fb).T * window[None, :]).astype(np.float32)   # (2C, L)
    return forward_basis, inverse_basis, window.astype(np.float32)


def window_sumsquare(window, n_frames, hop, n_fft):
    n = n_fft + hop * (n_frames - 1)
    x = np.zeros(n, dtype=np.float32)
    win_sq = window.astype(np.float32) ** 2
    for i in range(n_frames):
        s = i * hop
        x[s:min(n, s + n_fft)] += win_sq[:max(0, min(n_fft, n - s))]
    return x


# ------------------------------------------------------------------------------- Pallas kernel
def _denoiser_kernel(strength_ref, x_ref, fwd_ref, bias_ref, inv_r_ref, inv_i_ref,
                     env_ref, out_ref, *, batch, n_frames):
    B, F = batch, n_frames
    strength = strength_ref[0]                              # scalar from SMEM

    # One bf16 cast, then rebuild the (B*F, L) frame matrix from lane-aligned, sublane-shifted
    # slices of the non-duplicated (B, F_out, hop) layout:
    #   frames_b[:, d*hop:(d+1)*hop] == x_b[d:d+F, :]
    x_bf = x_ref[...].astype(jnp.bfloat16)                  # (B, F_out, hop)
    frames = jnp.concatenate(
        [jnp.concatenate([x_bf[b, d:d + F, :] for d in range(N_OVERLAP)], axis=1)
         for b in range(B)],
        axis=0)                                             # (B*F, L) bf16

    # Forward STFT: one fused bf16 MXU matmul against [real | imag] basis, f32 accumulation.
    spec = jnp.dot(frames, fwd_ref[...], preferred_element_type=jnp.float32)  # (B*F, 2*C_pad)
    real = spec[:, :CUTOFF_PAD]
    imag = spec[:, CUTOFF_PAD:]

    # |S| and 1/|S| via a single EUP rsqrt; padded lanes carry exact zeros.
    s = real * real + imag * imag
    r = lax.rsqrt(jnp.where(s > 0.0, s, 1.0))               # 1/|S|  (1 where |S| == 0)
    mag = s * r                                             # |S|
    # Denoise: subtract bias spectrum, clamp at 0.
    # NOTE: assumes strength >= 0 (bias is a magnitude, >= 0), so mag_d == 0 wherever s == 0
    # and the atan2(0,0) phase convention never matters -> no where-selects on cos/sin.
    mag_d = jnp.maximum(mag - bias_ref[...] * strength, 0.0)                  # (B*F, C_pad)
    t = mag_d * r
    coeff_r = (t * real).astype(jnp.bfloat16)               # mag_d * cos(phase)
    coeff_i = (t * imag).astype(jnp.bfloat16)               # mag_d * sin(phase)

    # Inverse STFT: two accumulating K=C_pad matmuls (no (B*F, 2*C_pad) f32 concat).
    inv_frames = (jnp.dot(coeff_r, inv_r_ref[...], preferred_element_type=jnp.float32)
                  + jnp.dot(coeff_i, inv_i_ref[...], preferred_element_type=jnp.float32))

    # Overlap-add fully in registers: sum zero-padded shifted segments, fuse the
    # window-sumsquare envelope, store each batch's (F_out, hop) block exactly once.
    env = env_ref[...]                                      # (F_out, hop)
    for b in range(B):                                      # static unroll (B small)
        inv_b = inv_frames[b * F:(b + 1) * F, :]            # (F, L)
        acc = None
        for d in range(N_OVERLAP):                          # static unroll
            seg = inv_b[:, d * HOP_LENGTH:(d + 1) * HOP_LENGTH]     # (F, hop), lane-aligned
            if d > 0:
                seg = jnp.concatenate(
                    [jnp.zeros((d, HOP_LENGTH), jnp.float32), seg], axis=0)
            if d < N_OVERLAP - 1:
                seg = jnp.concatenate(
                    [seg, jnp.zeros((N_OVERLAP - 1 - d, HOP_LENGTH), jnp.float32)], axis=0)
            acc = seg if acc is None else acc + seg         # (F_out, hop)
        out_ref[b] = acc * env


# ------------------------------------------------------------------------------------ wrapper
class PallasDenoiser:
    """Pallas port of Denoiser(vocoder, filter_length=512, n_overlap=4, win_length=512)."""

    def __init__(self, key, mode="zeros"):
        fwd, inv, window = make_stft_bases()
        self.window = window
        self.fwd_basis_np = fwd                                   # (2C, L), for the numpy reference
        self.inv_basis_np = inv                                   # (2C, L)

        # Fused, lane-padded forward basis and split, sublane-padded inverse bases
        # (bf16 MXU inputs; zeros in the padded lanes/rows keep padded channels exactly 0).
        fwd_fused = np.zeros((FILTER_LENGTH, 2 * CUTOFF_PAD), np.float32)
        fwd_fused[:, :CUTOFF] = fwd[:CUTOFF].T
        fwd_fused[:, CUTOFF_PAD:CUTOFF_PAD + CUTOFF] = fwd[CUTOFF:].T
        inv_real = np.zeros((CUTOFF_PAD, FILTER_LENGTH), np.float32)
        inv_real[:CUTOFF, :] = inv[:CUTOFF]
        inv_imag = np.zeros((CUTOFF_PAD, FILTER_LENGTH), np.float32)
        inv_imag[:CUTOFF, :] = inv[CUTOFF:]
        # TODO(synk): if tighter accuracy is needed, keep f32 bases + precision=HIGHEST instead.
        self.fwd_fused = jnp.asarray(fwd_fused, dtype=jnp.bfloat16)
        self.inv_real = jnp.asarray(inv_real, dtype=jnp.bfloat16)
        self.inv_imag = jnp.asarray(inv_imag, dtype=jnp.bfloat16)

        # Synthetic bias waveform (stands in for vocoder(mel_input); no checkpoint available).
        if mode == "zeros":
            bias_audio = jax.random.normal(key, (1, FILTER_LENGTH), dtype=jnp.float32) * 1e-2
        elif mode == "normal":
            bias_audio = jax.random.normal(key, (1, FILTER_LENGTH), dtype=jnp.float32)
        else:
            raise Exception(f"Mode {mode} if not supported")

        # bias_spec == magnitude of the first STFT frame of the bias audio (exact f32 math).
        pad = FILTER_LENGTH // 2
        padded = jnp.pad(bias_audio, ((0, 0), (pad, pad)), mode="reflect")
        frame0 = padded[:, :FILTER_LENGTH]                                        # (1, L)
        real0 = frame0 @ jnp.asarray(fwd[:CUTOFF].T)                              # (1, C)
        imag0 = frame0 @ jnp.asarray(fwd[CUTOFF:].T)                              # (1, C)
        mag0 = jnp.sqrt(real0 * real0 + imag0 * imag0)                            # (1, C)
        self.bias_spec = mag0                                                     # for the reference
        self.bias_pad = jnp.zeros((1, CUTOFF_PAD), jnp.float32).at[:, :CUTOFF].set(mag0)

    def __call__(self, audio, strength=0.1):
        audio = audio.astype(jnp.float32)
        B, T = audio.shape
        assert T % HOP_LENGTH == 0, "audio length must be a multiple of hop_length"
        pad = FILTER_LENGTH // 2
        padded = jnp.pad(audio, ((0, 0), (pad, pad)), mode="reflect")             # (B, T + L)
        T_pad = T + FILTER_LENGTH
        F = T // HOP_LENGTH + 1
        F_out = F + N_OVERLAP - 1
        assert F_out * HOP_LENGTH == T_pad
        # Zero-copy reshape: no 4x HBM duplication from unfolding frames in the wrapper.
        x = padded.reshape(B, F_out, HOP_LENGTH)

        # Window-sumsquare normalization envelope (+ filter_length/hop scale), as (F_out, hop).
        ws = window_sumsquare(self.window, F, HOP_LENGTH, FILTER_LENGTH)
        scale = FILTER_LENGTH / HOP_LENGTH
        env = np.where(ws > np.finfo(np.float32).tiny, scale / ws, scale).astype(np.float32)
        env2d = jnp.asarray(env.reshape(F_out, HOP_LENGTH))

        kernel = functools.partial(_denoiser_kernel, batch=B, n_frames=F)
        # Single invocation (no grid): all batches folded into the matmul M dimension; constant
        # bases are resident once in VMEM (no double-buffering).
        out = pl.pallas_call(
            kernel,
            out_shape=jax.ShapeDtypeStruct((B, F_out, HOP_LENGTH), jnp.float32),
            in_specs=[
                pl.BlockSpec(memory_space=pltpu.MemorySpace.SMEM),   # strength scalar
                pl.BlockSpec(memory_space=pltpu.MemorySpace.VMEM),   # padded audio (B,F_out,hop)
                pl.BlockSpec(memory_space=pltpu.MemorySpace.VMEM),   # fused fwd basis
                pl.BlockSpec(memory_space=pltpu.MemorySpace.VMEM),   # bias spectrum
                pl.BlockSpec(memory_space=pltpu.MemorySpace.VMEM),   # inverse basis (real)
                pl.BlockSpec(memory_space=pltpu.MemorySpace.VMEM),   # inverse basis (imag)
                pl.BlockSpec(memory_space=pltpu.MemorySpace.VMEM),   # env
            ],
            out_specs=pl.BlockSpec(memory_space=pltpu.MemorySpace.VMEM),
        )(
            jnp.asarray([strength], dtype=jnp.float32),
            x, self.fwd_fused, self.bias_pad, self.inv_real, self.inv_imag, env2d,
        )

        audio_denoised = out.reshape(B, T_pad)[:, pad:T_pad - pad]    # trim like STFT.inverse
        return audio_denoised[:, None, :]                             # (B, 1, T), conv1d NCT layout


# --------------------------------------------------------------------------- numpy reference
def numpy_reference(audio, bias_row, strength, fwd, inv, window):
    L, hop, C = FILTER_LENGTH, HOP_LENGTH, CUTOFF
    pad = L // 2
    padded = np.pad(audio, ((0, 0), (pad, pad)), mode="reflect")
    F = (padded.shape[1] - L) // hop + 1
    idx = np.arange(F)[:, None] * hop + np.arange(L)[None, :]
    frames = padded[:, idx]                                   # (B, F, L)
    ft = frames @ fwd.T                                       # (B, F, 2C)
    real, imag = ft[..., :C], ft[..., C:]
    mag = np.sqrt(real ** 2 + imag ** 2)
    phase = np.arctan2(imag, real)
    mag_d = np.maximum(mag - bias_row[None, None, :] * strength, 0.0)
    recomb = np.concatenate([mag_d * np.cos(phase), mag_d * np.sin(phase)], axis=-1)
    inv_frames = recomb @ inv                                 # (B, F, L)
    T_full = (F - 1) * hop + L
    out = np.zeros((audio.shape[0], T_full), dtype=np.float64)
    for f in range(F):
        out[:, f * hop:f * hop + L] += inv_frames[:, f]
    ws = window_sumsquare(window, F, hop, L)
    nzi = ws > np.finfo(np.float32).tiny
    out[:, nzi] /= ws[nzi]
    out *= L / hop
    return out[:, pad:-pad].astype(np.float32)


if __name__ == "__main__":
    key = jax.random.PRNGKey(0)
    k_bias, k_audio = jax.random.split(key)

    denoiser = PallasDenoiser(k_bias, mode="zeros")
    audio = jax.random.normal(k_audio, (2, 1024), dtype=jnp.float32)   # (B, num_samples)

    out = denoiser(audio, strength=0.1)
    out = jax.block_until_ready(out)
    assert out.shape == (2, 1, 1024), out.shape

    ref = numpy_reference(np.asarray(audio), np.asarray(denoiser.bias_spec)[0], 0.1,
                          denoiser.fwd_basis_np, denoiser.inv_basis_np, denoiser.window)
    # Tolerance sized for bf16 MXU inputs (f32 accumulation, f32 elementwise math).
    np.testing.assert_allclose(np.asarray(out)[:, 0, :], ref, rtol=2e-2, atol=2e-2)

    print("KERNEL_OK")
</pallas_src>

<mosaic_0001>
module attributes {stable_mosaic.version = 11 : i64} {
  func.func @_denoiser_kernel(%arg0: memref<1xf32, #tpu.memory_space<smem>>, %arg1: memref<2x12x128xf32, #tpu.memory_space<vmem>>, %arg2: memref<512x768xbf16, #tpu.memory_space<vmem>>, %arg3: memref<1x384xf32, #tpu.memory_space<vmem>>, %arg4: memref<384x512xbf16, #tpu.memory_space<vmem>>, %arg5: memref<384x512xbf16, #tpu.memory_space<vmem>>, %arg6: memref<12x128xf32, #tpu.memory_space<vmem>>, %arg7: memref<2x12x128xf32, #tpu.memory_space<vmem>>) attributes {dimension_semantics = [], scalar_prefetch = 0 : i64, scratch_operands = 0 : i64, tpu.core_type = #tpu.core_type<tc>} {
    %c0 = arith.constant 0 : index
    %0 = memref.load %arg0[%c0] : memref<1xf32, #tpu.memory_space<smem>>
    %c0_0 = arith.constant 0 : index
    %c0_1 = arith.constant 0 : index
    %c0_2 = arith.constant 0 : index
    %1 = vector.load %arg1[%c0_0, %c0_1, %c0_2] : memref<2x12x128xf32, #tpu.memory_space<vmem>>, vector<2x12x128xf32>
    %2 = arith.truncf %1 : vector<2x12x128xf32> to vector<2x12x128xbf16>
    %3 = vector.extract_strided_slice %2 {offsets = [0, 0, 0], sizes = [1, 9, 128], strides = [1, 1, 1]} : vector<2x12x128xbf16> to vector<1x9x128xbf16>
    %4 = vector.shape_cast %3 : vector<1x9x128xbf16> to vector<9x128xbf16>
    %5 = vector.extract_strided_slice %2 {offsets = [0, 1, 0], sizes = [1, 9, 128], strides = [1, 1, 1]} : vector<2x12x128xbf16> to vector<1x9x128xbf16>
    %6 = vector.shape_cast %5 : vector<1x9x128xbf16> to vector<9x128xbf16>
    %7 = vector.extract_strided_slice %2 {offsets = [0, 2, 0], sizes = [1, 9, 128], strides = [1, 1, 1]} : vector<2x12x128xbf16> to vector<1x9x128xbf16>
    %8 = vector.shape_cast %7 : vector<1x9x128xbf16> to vector<9x128xbf16>
    %9 = vector.extract_strided_slice %2 {offsets = [0, 3, 0], sizes = [1, 9, 128], strides = [1, 1, 1]} : vector<2x12x128xbf16> to vector<1x9x128xbf16>
    %10 = vector.shape_cast %9 : vector<1x9x128xbf16> to vector<9x128xbf16>
    %11 = tpu.concatenate %4, %6, %8, %10 in 1 : vector<9x128xbf16>, vector<9x128xbf16>, vector<9x128xbf16>, vector<9x128xbf16> -> vector<9x512xbf16>
    %12 = vector.extract_strided_slice %2 {offsets = [1, 0, 0], sizes = [1, 9, 128], strides = [1, 1, 1]} : vector<2x12x128xbf16> to vector<1x9x128xbf16>
    %13 = vector.shape_cast %12 : vector<1x9x128xbf16> to vector<9x128xbf16>
    %14 = vector.extract_strided_slice %2 {offsets = [1, 1, 0], sizes = [1, 9, 128], strides = [1, 1, 1]} : vector<2x12x128xbf16> to vector<1x9x128xbf16>
    %15 = vector.shape_cast %14 : vector<1x9x128xbf16> to vector<9x128xbf16>
    %16 = vector.extract_strided_slice %2 {offsets = [1, 2, 0], sizes = [1, 9, 128], strides = [1, 1, 1]} : vector<2x12x128xbf16> to vector<1x9x128xbf16>
    %17 = vector.shape_cast %16 : vector<1x9x128xbf16> to vector<9x128xbf16>
    %18 = vector.extract_strided_slice %2 {offsets = [1, 3, 0], sizes = [1, 9, 128], strides = [1, 1, 1]} : vector<2x12x128xbf16> to vector<1x9x128xbf16>
    %19 = vector.shape_cast %18 : vector<1x9x128xbf16> to vector<9x128xbf16>
    %20 = tpu.concatenate %13, %15, %17, %19 in 1 : vector<9x128xbf16>, vector<9x128xbf16>, vector<9x128xbf16>, vector<9x128xbf16> -> vector<9x512xbf16>
    %21 = tpu.concatenate %11, %20 in 0 : vector<9x512xbf16>, vector<9x512xbf16> -> vector<18x512xbf16>
    %c0_3 = arith.constant 0 : index
    %c0_4 = arith.constant 0 : index
    %22 = vector.load %arg2[%c0_3, %c0_4] : memref<512x768xbf16, #tpu.memory_space<vmem>>, vector<512x768xbf16>
    %cst = arith.constant dense<0.000000e+00> : vector<18x768xf32>
    %23 = tpu.matmul %21, %22, %cst {dimension_numbers = #tpu.dot_dimension_numbers<[1], [0], [0], [1], [0, 0, 1, 1], [], []>} : vector<18x512xbf16>, vector<512x768xbf16>, vector<18x768xf32> -> vector<18x768xf32>
    %24 = vector.extract_strided_slice %23 {offsets = [0, 0], sizes = [18, 384], strides = [1, 1]} : vector<18x768xf32> to vector<18x384xf32>
    %25 = vector.extract_strided_slice %23 {offsets = [0, 384], sizes = [18, 384], strides = [1, 1]} : vector<18x768xf32> to vector<18x384xf32>
    %26 = arith.mulf %24, %24 : vector<18x384xf32>
    %27 = arith.mulf %25, %25 : vector<18x384xf32>
    %28 = arith.addf %26, %27 : vector<18x384xf32>
    %cst_5 = arith.constant 0.000000e+00 : f32
    %29 = vector.broadcast %cst_5 : f32 to vector<18x384xf32>
    %30 = arith.cmpf ogt, %28, %29 : vector<18x384xf32>
    %cst_6 = arith.constant 1.000000e+00 : f32
    %31 = vector.broadcast %cst_6 : f32 to vector<18x384xf32>
    %32 = arith.select %30, %28, %31 : vector<18x384xi1>, vector<18x384xf32>
    %33 = math.rsqrt %32 : vector<18x384xf32>
    %34 = arith.mulf %28, %33 : vector<18x384xf32>
    %c0_7 = arith.constant 0 : index
    %c0_8 = arith.constant 0 : index
    %35 = vector.load %arg3[%c0_7, %c0_8] : memref<1x384xf32, #tpu.memory_space<vmem>>, vector<1x384xf32>
    %36 = vector.broadcast %0 : f32 to vector<1x384xf32>
    %37 = arith.mulf %35, %36 : vector<1x384xf32>
    %38 = vector.broadcast %37 : vector<1x384xf32> to vector<18x384xf32>
    %39 = arith.subf %34, %38 : vector<18x384xf32>
    %cst_9 = arith.constant 0.000000e+00 : f32
    %40 = vector.broadcast %cst_9 : f32 to vector<18x384xf32>
    %41 = arith.maximumf %39, %40 : vector<18x384xf32>
    %42 = arith.mulf %41, %33 : vector<18x384xf32>
    %43 = arith.mulf %42, %24 : vector<18x384xf32>
    %44 = arith.truncf %43 : vector<18x384xf32> to vector<18x384xbf16>
    %45 = arith.mulf %42, %25 : vector<18x384xf32>
    %46 = arith.truncf %45 : vector<18x384xf32> to vector<18x384xbf16>
    %c0_10 = arith.constant 0 : index
    %c0_11 = arith.constant 0 : index
    %47 = vector.load %arg4[%c0_10, %c0_11] : memref<384x512xbf16, #tpu.memory_space<vmem>>, vector<384x512xbf16>
    %cst_12 = arith.constant dense<0.000000e+00> : vector<18x512xf32>
    %48 = tpu.matmul %44, %47, %cst_12 {dimension_numbers = #tpu.dot_dimension_numbers<[1], [0], [0], [1], [0, 0, 1, 1], [], []>} : vector<18x384xbf16>, vector<384x512xbf16>, vector<18x512xf32> -> vector<18x512xf32>
    %c0_13 = arith.constant 0 : index
    %c0_14 = arith.constant 0 : index
    %49 = vector.load %arg5[%c0_13, %c0_14] : memref<384x512xbf16, #tpu.memory_space<vmem>>, vector<384x512xbf16>
    %cst_15 = arith.constant dense<0.000000e+00> : vector<18x512xf32>
    %50 = tpu.matmul %46, %49, %cst_15 {dimension_numbers = #tpu.dot_dimension_numbers<[1], [0], [0], [1], [0, 0, 1, 1], [], []>} : vector<18x384xbf16>, vector<384x512xbf16>, vector<18x512xf32> -> vector<18x512xf32>
    %51 = arith.addf %48, %50 : vector<18x512xf32>
    %c0_16 = arith.constant 0 : index
    %c0_17 = arith.constant 0 : index
    %52 = vector.load %arg6[%c0_16, %c0_17] : memref<12x128xf32, #tpu.memory_space<vmem>>, vector<12x128xf32>
    %53 = vector.extract_strided_slice %51 {offsets = [0, 0], sizes = [9, 512], strides = [1, 1]} : vector<18x512xf32> to vector<9x512xf32>
    %54 = vector.extract_strided_slice %53 {offsets = [0, 0], sizes = [9, 128], strides = [1, 1]} : vector<9x512xf32> to vector<9x128xf32>
    %cst_18 = arith.constant 0.000000e+00 : f32
    %55 = vector.broadcast %cst_18 : f32 to vector<3x128xf32>
    %56 = tpu.concatenate %54, %55 in 0 : vector<9x128xf32>, vector<3x128xf32> -> vector<12x128xf32>
    %57 = vector.extract_strided_slice %53 {offsets = [0, 128], sizes = [9, 128], strides = [1, 1]} : vector<9x512xf32> to vector<9x128xf32>
    %cst_19 = arith.constant 0.000000e+00 : f32
    %58 = vector.broadcast %cst_19 : f32 to vector<1x128xf32>
    %59 = tpu.concatenate %58, %57 in 0 : vector<1x128xf32>, vector<9x128xf32> -> vector<10x128xf32>
    %cst_20 = arith.constant 0.000000e+00 : f32
    %60 = vector.broadcast %cst_20 : f32 to vector<2x128xf32>
    %61 = tpu.concatenate %59, %60 in 0 : vector<10x128xf32>, vector<2x128xf32> -> vector<12x128xf32>
    %62 = arith.addf %56, %61 : vector<12x128xf32>
    %63 = vector.extract_strided_slice %53 {offsets = [0, 256], sizes = [9, 128], strides = [1, 1]} : vector<9x512xf32> to vector<9x128xf32>
    %cst_21 = arith.constant 0.000000e+00 : f32
    %64 = vector.broadcast %cst_21 : f32 to vector<2x128xf32>
    %65 = tpu.concatenate %64, %63 in 0 : vector<2x128xf32>, vector<9x128xf32> -> vector<11x128xf32>
    %cst_22 = arith.constant 0.000000e+00 : f32
    %66 = vector.broadcast %cst_22 : f32 to vector<1x128xf32>
    %67 = tpu.concatenate %65, %66 in 0 : vector<11x128xf32>, vector<1x128xf32> -> vector<12x128xf32>
    %68 = arith.addf %62, %67 : vector<12x128xf32>
    %69 = vector.extract_strided_slice %53 {offsets = [0, 384], sizes = [9, 128], strides = [1, 1]} : vector<9x512xf32> to vector<9x128xf32>
    %cst_23 = arith.constant 0.000000e+00 : f32
    %70 = vector.broadcast %cst_23 : f32 to vector<3x128xf32>
    %71 = tpu.concatenate %70, %69 in 0 : vector<3x128xf32>, vector<9x128xf32> -> vector<12x128xf32>
    %72 = arith.addf %68, %71 : vector<12x128xf32>
    %73 = arith.mulf %72, %52 : vector<12x128xf32>
    %c0_24 = arith.constant 0 : index
    %c0_25 = arith.constant 0 : index
    %c0_26 = arith.constant 0 : index
    %74 = vector.load %arg7[%c0_24, %c0_25, %c0_26] : memref<2x12x128xf32, #tpu.memory_space<vmem>>, vector<1x12x128xf32>
    %75 = vector.shape_cast %74 : vector<1x12x128xf32> to vector<12x128xf32>
    %76 = vector.shape_cast %73 : vector<12x128xf32> to vector<1x12x128xf32>
    tpu.vector_store %arg7[%c0_24, %c0_25, %c0_26], %76 {strides = array<i32>} : memref<2x12x128xf32, #tpu.memory_space<vmem>>, vector<1x12x128xf32>,
    %77 = vector.extract_strided_slice %51 {offsets = [9, 0], sizes = [9, 512], strides = [1, 1]} : vector<18x512xf32> to vector<9x512xf32>
    %78 = vector.extract_strided_slice %77 {offsets = [0, 0], sizes = [9, 128], strides = [1, 1]} : vector<9x512xf32> to vector<9x128xf32>
    %cst_27 = arith.constant 0.000000e+00 : f32
    %79 = vector.broadcast %cst_27 : f32 to vector<3x128xf32>
    %80 = tpu.concatenate %78, %79 in 0 : vector<9x128xf32>, vector<3x128xf32> -> vector<12x128xf32>
    %81 = vector.extract_strided_slice %77 {offsets = [0, 128], sizes = [9, 128], strides = [1, 1]} : vector<9x512xf32> to vector<9x128xf32>
    %cst_28 = arith.constant 0.000000e+00 : f32
    %82 = vector.broadcast %cst_28 : f32 to vector<1x128xf32>
    %83 = tpu.concatenate %82, %81 in 0 : vector<1x128xf32>, vector<9x128xf32> -> vector<10x128xf32>
    %cst_29 = arith.constant 0.000000e+00 : f32
    %84 = vector.broadcast %cst_29 : f32 to vector<2x128xf32>
    %85 = tpu.concatenate %83, %84 in 0 : vector<10x128xf32>, vector<2x128xf32> -> vector<12x128xf32>
    %86 = arith.addf %80, %85 : vector<12x128xf32>
    %87 = vector.extract_strided_slice %77 {offsets = [0, 256], sizes = [9, 128], strides = [1, 1]} : vector<9x512xf32> to vector<9x128xf32>
    %cst_30 = arith.constant 0.000000e+00 : f32
    %88 = vector.broadcast %cst_30 : f32 to vector<2x128xf32>
    %89 = tpu.concatenate %88, %87 in 0 : vector<2x128xf32>, vector<9x128xf32> -> vector<11x128xf32>
    %cst_31 = arith.constant 0.000000e+00 : f32
    %90 = vector.broadcast %cst_31 : f32 to vector<1x128xf32>
    %91 = tpu.concatenate %89, %90 in 0 : vector<11x128xf32>, vector<1x128xf32> -> vector<12x128xf32>
    %92 = arith.addf %86, %91 : vector<12x128xf32>
    %93 = vector.extract_strided_slice %77 {offsets = [0, 384], sizes = [9, 128], strides = [1, 1]} : vector<9x512xf32> to vector<9x128xf32>
    %cst_32 = arith.constant 0.000000e+00 : f32
    %94 = vector.broadcast %cst_32 : f32 to vector<3x128xf32>
    %95 = tpu.concatenate %94, %93 in 0 : vector<3x128xf32>, vector<9x128xf32> -> vector<12x128xf32>
    %96 = arith.addf %92, %95 : vector<12x128xf32>
    %97 = arith.mulf %96, %52 : vector<12x128xf32>
    %c1 = arith.constant 1 : index
    %c0_33 = arith.constant 0 : index
    %c0_34 = arith.constant 0 : index
    %98 = vector.load %arg7[%c1, %c0_33, %c0_34] : memref<2x12x128xf32, #tpu.memory_space<vmem>>, vector<1x12x128xf32>
    %99 = vector.shape_cast %98 : vector<1x12x128xf32> to vector<12x128xf32>
    %100 = vector.shape_cast %97 : vector<12x128xf32> to vector<1x12x128xf32>
    tpu.vector_store %arg7[%c1, %c0_33, %c0_34], %100 {strides = array<i32>} : memref<2x12x128xf32, #tpu.memory_space<vmem>>, vector<1x12x128xf32>,
    return
  }
}

</mosaic_0001>

<bundles_post_ra>
// kernel: tpu_custom_call.1
= control target key start
LH: loop header
LB: loop body
LE: loop exit
PB: predicated region body
PF: predicated region fallthrough
CT: control target
= control target key end

     0   :  { %13 = vsyncpa [#allocation4], 0  ;;  %s4903_s0 = inlined_call_operand.<no memory space> [shape: f32[1], index: 0, kind: input, shape index: {}]   ;;  %s4904_s1 = inlined_call_operand.vmem [shape: f32[2,12,128], index: 1, kind: input, shape index: {}]   ;;  %s4905_s2 = inlined_call_operand.hbm [shape: bf16[512,768], index: 2, kind: input, shape index: {}]   ;;  %s4906_s3 = inlined_call_operand.vmem [shape: f32[1,384], index: 3, kind: input, shape index: {}]   ;;  %s4907_s4 = inlined_call_operand.hbm [shape: bf16[384,512], index: 4, kind: input, shape index: {}]   ;;  %s4908_s5 = inlined_call_operand.hbm [shape: bf16[384,512], index: 5, kind: input, shape index: {}]   ;;  %s4909_s6 = inlined_call_operand.vmem [shape: f32[12,128], index: 6, kind: input, shape index: {}]   ;;  %s4910_s7 = inlined_call_operand.vmem [shape: f32[2,12,128], index: 7, kind: output, shape index: {}]  }
   0x1   :  { %14 = vsyncpa [#allocation6], 0  ;;  %s4513_s24 = smov [#allocation5]   ;;  %s4443_s28 = scalar_lea.hbm %s4907_s4, 12288 }
   0x2   :  { %s38_s25 = sshll.u32 %s4513_s24, 4  ;;  %p4444_p0 = scmp.ne.s32.totalorder %s4907_s4, %s4443_s28  ;;  %s39_s25 = int_to_ptr.vmem [resolvable:$true] %s38_s25 }
   0x3   :  { %p4447_p1 = scmp.lt.u32.totalorder %s4443_s28, %s4907_s4 }
   0x5   :  { %p4449_p2 = pnand %p4447_p1, %p4444_p0 }
   0x7   :  { %4452 = shalt.err (!%p4449_p2)
}
   0x8   :  { %s4453_s10 = scalar_lea.vmem %s39_s25, 12288  ;;  %p4458_p4 = scmp.lt.s32.totalorder %s39_s25, %s39_s25 }
   0x9   :  { %p4454_p3 = scmp.ne.s32.totalorder %s39_s25, %s4453_s10  ;;  %p4459_p5 = scmp.lt.s32.totalorder %s4453_s10, %s4453_s10 }
   0xb   :  { %p4460_p6 = por %p4459_p5, %p4458_p4 }
   0xd   :  { %p4461_p7 = pnand %p4460_p6, %p4454_p3 }
   0xf   :  { %4464 = shalt.err (!%p4461_p7)
}
  0x10   :  { %s4514_s11 = smov 256   ;;  %s4515_s12 = smov 16  }
  0x11   :  { %44 = dma.hbm_to_vmem [thread:$0]  %s4907_s4, 12288, %s39_s25, [#allocation6], %s4514_s11, %s4514_s11, %s4515_s12  }
  0x12   :  { %s4516_s15 = smov [#allocation3]   ;;  %s4465_s19 = scalar_lea.hbm %s4905_s2, 24576 }
  0x13   :  { %s24_s16 = sshll.u32 %s4516_s15, 4  ;;  %p4466_p8 = scmp.ne.s32.totalorder %s4905_s2, %s4465_s19  ;;  %s25_s16 = int_to_ptr.vmem [resolvable:$true] %s24_s16 }
  0x14   :  { %p4469_p9 = scmp.lt.u32.totalorder %s4465_s19, %s4905_s2 }
  0x16   :  { %p4471_p10 = pnand %p4469_p9, %p4466_p8 }
  0x18   :  { %4474 = shalt.err (!%p4471_p10)
}
  0x19   :  { %s4475_s24 = scalar_lea.vmem %s25_s16, 24576  ;;  %p4480_p12 = scmp.lt.s32.totalorder %s25_s16, %s25_s16 }
  0x1a   :  { %p4476_p11 = scmp.ne.s32.totalorder %s25_s16, %s4475_s24  ;;  %p4481_p13 = scmp.lt.s32.totalorder %s4475_s24, %s4475_s24 }
  0x1c   :  { %p4482_p0 = por %p4481_p13, %p4480_p12 }
  0x1e   :  { %p4483_p1 = pnand %p4482_p0, %p4476_p11 }
  0x20   :  { %4486 = shalt.err (!%p4483_p1)
}
  0x21   :  { %s4517_s4 = smov 384   ;;  %s4518_s25 = smov 24  }
  0x22   :  { %30 = dma.hbm_to_vmem [thread:$0]  %s4905_s2, 24576, %s25_s16, [#allocation4], %s4517_s4, %s4517_s4, %s4518_s25  }
  0x23   :  { %s4519_s28 = smov [#allocation7]   ;;  %s4487_s9 = scalar_lea.hbm %s4908_s5, 12288 }
  0x24   :  { %s50_s29 = sshll.u32 %s4519_s28, 4  ;;  %p4488_p2 = scmp.ne.s32.totalorder %s4908_s5, %s4487_s9  ;;  %s51_s29 = int_to_ptr.vmem [resolvable:$true] %s50_s29 }
  0x25   :  { %p4491_p3 = scmp.lt.u32.totalorder %s4487_s9, %s4908_s5 }
  0x27   :  { %p4493_p4 = pnand %p4491_p3, %p4488_p2 }
  0x29   :  { %4496 = shalt.err (!%p4493_p4)
}
  0x2a   :  { %s4497_s17 = scalar_lea.vmem %s51_s29, 12288  ;;  %p4502_p6 = scmp.lt.s32.totalorder %s51_s29, %s51_s29 }
  0x2b   :  { %p4498_p5 = scmp.ne.s32.totalorder %s51_s29, %s4497_s17  ;;  %p4503_p7 = scmp.lt.s32.totalorder %s4497_s17, %s4497_s17 }
  0x2d   :  { %p4504_p8 = por %p4503_p7, %p4502_p6 }
  0x2f   :  { %p4505_p9 = pnand %p4504_p8, %p4498_p5 }
  0x31   :  { %4508 = shalt.err (!%p4505_p9)
}
  0x32   :  { %56 = dma.hbm_to_vmem [thread:$0]  %s4908_s5, 12288, %s51_s29, [#allocation6], %s4514_s11, %s4514_s11, %s4515_s12  }
  0x33   :  { %4509 = dma.done.wait [#allocation4], 24576  }
  0x34   :  { %4510 = vsyncadd [#allocation4], 4294942720 }
  0x35   :  { %4511 = dma.done.wait [#allocation6], 24576  }
  0x36   :  { %4512 = vsyncadd [#allocation6], 4294942720  ;;  %v3849_v0 = vld [vmem:[#allocation3 + $0x4] ss:$24 sps:$4 sm:$0xff]   ;;  %v3851_v1 = vld [vmem:[#allocation3] ss:$24 sps:$4 sm:$0xff]  }
  0x37   :  { %1293 = vmatprep.subr.bf16.mxu0 %v3849_v0  ;;  %v3852_v2 = vld [vmem:[#allocation3 + $0x34] ss:$24 sps:$4 sm:$0xff]   ;;  %v3854_v3 = vld [vmem:[#allocation3 + $0x30] ss:$24 sps:$4 sm:$0xff]   ;;  %v3855_v4 = vld [vmem:[#allocation3 + $0x64] ss:$24 sps:$4 sm:$0xff]  }
  0x38   :  { %1294 = vmatpush1.bf16.msra.mxu0 %v3851_v1  ;;  %v3857_v5 = vld [vmem:[#allocation3 + $0x60] ss:$24 sps:$4 sm:$0xff]   ;;  %v3858_v6 = vld [vmem:[#allocation3 + $0x94] ss:$24 sps:$4 sm:$0xff]   ;;  %v3860_v7 = vld [vmem:[#allocation3 + $0x90] ss:$24 sps:$4 sm:$0xff]  }
  0x39   :  { %1295 = vmatprep.subr.bf16.mxu0 %v3852_v2  ;;  %v3861_v8 = vld [vmem:[#allocation3 + $0xc4] ss:$24 sps:$4 sm:$0xff]   ;;  %v3863_v9 = vld [vmem:[#allocation3 + $0xc0] ss:$24 sps:$4 sm:$0xff]   ;;  %v3864_v10 = vld [vmem:[#allocation3 + $0xf4] ss:$24 sps:$4 sm:$0xff]  }
  0x3a   :  { %v3866_v11 = vld [vmem:[#allocation3 + $0xf0] ss:$24 sps:$4 sm:$0xff]   ;;  %v3867_v12 = vld [vmem:[#allocation3 + $0x124] ss:$24 sps:$4 sm:$0xff]   ;;  %v73_v16 = vld [vmem:[%s4904_s1 + $0x18] sm:$0xf] }
  0x3b   :  { %v70_v13 = vld [vmem:[%s4904_s1] sm:$0xff]  ;;  %v71_v14 = vld [vmem:[%s4904_s1 + $0x8] sm:$0xf]  ;;  %v72_v15 = vld [vmem:[%s4904_s1 + $0x10] sm:$0xff]  ;;  %vm134_vm0 = vcmask 1044480   ;;  %vm3300_vm12 = vcmask 1040384  }
  0x3c   :  { %1296 = vmatpush1.bf16.msra.mxu0 %v3854_v3  ;;  %v4615_v17 = vpack.c.bf16 %v71_v14, %v70_v13  ;;  %v3869_v18 = vld [vmem:[#allocation3 + $0x120] ss:$24 sps:$4 sm:$0xff]   ;;  %v75_v19 = vpack.c.bf16 %v73_v16, %v72_v15  ;;  %v3870_v20 = vld [vmem:[#allocation3 + $0x154] ss:$24 sps:$4 sm:$0xff]   ;;  %v3872_v24 = vld [vmem:[#allocation3 + $0x150] ss:$24 sps:$4 sm:$0xff]  }
  0x3d   :  { %1297 = vmatprep.subr.bf16.mxu0 %v3855_v4  ;;  %v3873_v26 = vld [vmem:[#allocation3 + $0x184] ss:$24 sps:$4 sm:$0xff]   ;;  %vm135_vm1 = vsmask.f32 4352  ;;  %v3875_v30 = vld [vmem:[#allocation3 + $0x180] ss:$24 sps:$4 sm:$0xff]  }
  0x3e   :  { %v79_v21 = vshll.u32 %v4615_v17, 16  ;;  %v4618_v22 = vshrl.u32 %v75_v19, 16  ;;  %v4620_v23 = vshll.u32 %v75_v19, 16  ;;  %v77_v27 = vshrl.u32 %v4615_v17, 16  ;;  %v3876_v33 = vld [vmem:[#allocation3 + $0x1b4] ss:$24 sps:$4 sm:$0xff]   ;;  %vm4629_vm2 = vmand %vm134_vm0, %vm135_vm1 }
  0x3f   :  { %v99_v34 = vrot.slane %v75_v19, 1  ;;  %v3878_v39 = vld [vmem:[#allocation3 + $0x1b0] ss:$24 sps:$4 sm:$0xff]   ;;  %v3879_v43 = vld [vmem:[#allocation3 + $0x1e4] ss:$24 sps:$4 sm:$0xff]   ;;  %v85_v45 = vrot.slane %v4615_v17, 1 }
  0x40   :  { %1298 = vmatpush1.bf16.msra.mxu0 %v3857_v5  ;;  %v96_v25 = vrot.slane %v4620_v23, 1  ;;  %v81_v28 = vrot.slane %v79_v21, 1  ;;  %v3881_v48 = vld [vmem:[#allocation3 + $0x1e0] ss:$24 sps:$4 sm:$0xff]   ;;  %v3882_v49 = vld [vmem:[#allocation3 + $0x214] ss:$24 sps:$4 sm:$0xff]  }
  0x41   :  { %1299 = vmatprep.subr.bf16.mxu0 %v3858_v6  ;;  %v115_v41 = vshrl.u32 %v99_v34, 16  ;;  %v118_v42 = vshll.u32 %v99_v34, 16  ;;  %v3884_v52 = vld [vmem:[#allocation3 + $0x210] ss:$24 sps:$4 sm:$0xff]   ;;  %v3885_v53 = vld [vmem:[#allocation3 + $0x244] ss:$24 sps:$4 sm:$0xff]  }
  0x42   :  { %v97_v29 = vor.u32 %v96_v25, %v4618_v22  ;;  %v82_v35 = vor.u32 %v81_v28, %v77_v27  ;;  %v3887_v54 = vld [vmem:[#allocation3 + $0x240] ss:$24 sps:$4 sm:$0xff]   ;;  %v3888_v55 = vld [vmem:[#allocation3 + $0x274] ss:$24 sps:$4 sm:$0xff]   ;;  %v3890_v56 = vld [vmem:[#allocation3 + $0x270] ss:$24 sps:$4 sm:$0xff]  }
  0x43   :  { %v117_v46 = vrot.slane %v115_v41, 3  ;;  %v120_v47 = vrot.slane %v118_v42, 4  ;;  %v3891_v57 = vld [vmem:[#allocation3 + $0x2a4] ss:$24 sps:$4 sm:$0xff]   ;;  %v100_v58 = vrot.slane %v4618_v22, 1  ;;  %v101_v59 = vrot.slane %v4620_v23, 2 }
  0x44   :  { %1300 = vmatpush1.bf16.msra.mxu0 %v3860_v7  ;;  %v107_v31 = vshrl.u32 %v97_v29, 16  ;;  %v110_v32 = vshll.u32 %v97_v29, 16  ;;  %v3893_v60 = vld [vmem:[#allocation3 + $0x2a0] ss:$24 sps:$4 sm:$0xff]   ;;  %v103_v61 = vrot.slane %v4618_v22, 3  ;;  %v104_v62 = vrot.slane %v4620_v23, 4 }
  0x45   :  { %1301 = vmatprep.subr.bf16.mxu0 %v3861_v8  ;;  %v4642_v50 = vor.u32 %v120_v47, %v117_v46  ;;  %v3894_v63 = vld [vmem:[#allocation3 + $0x2d4] ss:$24 sps:$4 sm:$0xff]   ;;  %v102_v0 = vor.u32 %v101_v59, %v100_v58  ;;  %v3896_v1 = vld [vmem:[#allocation3 + $0x2d0] ss:$24 sps:$4 sm:$0xff]   ;;  %v3899_v3 = vld [vmem:[#allocation3 + $0x304] ss:$24 sps:$4 sm:$0xff]  }
  0x46   :  { %v109_v36 = vrot.slane %v107_v31, 3  ;;  %v112_v37 = vrot.slane %v110_v32, 4  ;;  %v4653_v2 = vor.u32 %v104_v62, %v103_v61  ;;  %v3897_v6 = vld [vmem:[#allocation3 + $0x300] ss:$24 sps:$4 sm:$0xff]   ;;  %v3902_v8 = vld [vmem:[#allocation3 + $0x334] ss:$24 sps:$4 sm:$0xff]  }
  0x47   :  { %v4647_v51 = vsel %vm4629_vm2, %v85_v45, %v4642_v50  ;;  %v123_v4 = vshrl.u32 %v102_v0, 16  ;;  %v126_v5 = vshll.u32 %v102_v0, 16  ;;  %v3900_v13 = vld [vmem:[#allocation3 + $0x330] ss:$24 sps:$4 sm:$0xff]   ;;  %v3905_v14 = vld [vmem:[#allocation3 + $0x364] ss:$24 sps:$4 sm:$0xff]  }
  0x48   :  { %1302 = vmatpush1.bf16.msra.mxu0 %v3863_v9  ;;  %v4633_v40 = vor.u32 %v112_v37, %v109_v36  ;;  %v4659_v7 = vsel %vm4629_vm2, %v4615_v17, %v4653_v2  ;;  %v87_v9 = vrot.slane %v77_v27, 1  ;;  %v3908_v19 = vld [vmem:[#allocation3 + $0x394] ss:$24 sps:$4 sm:$0xff]   ;;  %v3909_v22 = vld [vmem:[#allocation3 + $0x3c0] ss:$24 sps:$4 sm:$0xff]   ;;  %vm3310_vm13 = vcmask 1041408  }
  0x49   :  { %1303 = vmatprep.subr.bf16.mxu0 %v3864_v10  ;;  %v88_v10 = vrot.slane %v79_v21, 2  ;;  %v3911_v21 = vld [vmem:[#allocation3 + $0x3c4] ss:$24 sps:$4 sm:$0xff]   ;;  %v3914_v23 = vld [vmem:[#allocation3 + $0x3f4] ss:$24 sps:$4 sm:$0xff]   ;;  %vm3342_vm14 = vcmask 1046528  }
  0x4a   :  { %v4638_v44 = vsel %vm4629_vm2, %v82_v35, %v4633_v40  ;;  %v3917_v25 = vld [vmem:[#allocation3 + $0x424] ss:$24 sps:$4 sm:$0xff]   ;;  %v3920_v27 = vld [vmem:[#allocation3 + $0x454] ss:$24 sps:$4 sm:$0xff]   ;;  %v3918_v28 = vld [vmem:[#allocation3 + $0x450] ss:$24 sps:$4 sm:$0xff]  }
  0x4b   :  { %1325 = vmatprep.mubr.bf16.mxu0 %v4638_v44  ;;  %v89_v15 = vor.u32 %v88_v10, %v87_v9  ;;  %v3923_v29 = vld [vmem:[#allocation3 + $0x484] ss:$24 sps:$4 sm:$0xff]   ;;  %v3926_v31 = vld [vmem:[#allocation3 + $0x4b4] ss:$24 sps:$4 sm:$0xff]   ;;  %v3924_v32 = vld [vmem:[#allocation3 + $0x4b0] ss:$24 sps:$4 sm:$0xff]  }
  0x4c   :  { %1304 = vmatpush1.bf16.msra.mxu0 %v3866_v11  ;;  %v125_v11 = vrot.slane %v123_v4, 3  ;;  %v3927_v34 = vld [vmem:[#allocation3 + $0x4e0] ss:$24 sps:$4 sm:$0xff]   ;;  %v3932_v35 = vld [vmem:[#allocation3 + $0x514] ss:$24 sps:$4 sm:$0xff]   ;;  %vm3322_vm15 = vcmask 1042432  }
  0x4d   :  { %1305 = vmatprep.subr.bf16.mxu0 %v3867_v12  ;;  %v128_v12 = vrot.slane %v126_v5, 4  ;;  %v3930_v36 = vld [vmem:[#allocation3 + $0x510] ss:$24 sps:$4 sm:$0xff]   ;;  %v3935_v37 = vld [vmem:[#allocation3 + $0x544] ss:$24 sps:$4 sm:$0xff]  }
  0x4e   :  { %v3933_v38 = vld [vmem:[#allocation3 + $0x540] ss:$24 sps:$4 sm:$0xff]   ;;  %v3936_v41 = vld [vmem:[#allocation3 + $0x570] ss:$24 sps:$4 sm:$0xff]   ;;  %v3941_v42 = vld [vmem:[#allocation3 + $0x5a4] ss:$24 sps:$4 sm:$0xff]  }
  0x4f   :  { %v4667_v16 = vor.u32 %v128_v12, %v125_v11  ;;  %v3944_v45 = vld [vmem:[#allocation3 + $0x5d4] ss:$24 sps:$4 sm:$0xff]   ;;  %v3942_v46 = vld [vmem:[#allocation3 + $0x5d0] ss:$24 sps:$4 sm:$0xff]  }
  0x50   :  { %1306 = vmatpush1.bf16.msra.mxu0 %v3869_v18  ;;  %v3903_v18 = vld [vmem:[#allocation3 + $0x360] ss:$24 sps:$4 sm:$0xff]   ;;  %v3947_v47 = vld [vmem:[#allocation3 + $0xc] ss:$24 sps:$4 sm:$0xff]   ;;  %v3962_v59 = vld [vmem:[#allocation3 + $0xfc] ss:$24 sps:$4 sm:$0xff]  }
  0x51   :  { %1307 = vmatprep.subr.bf16.mxu0 %v3870_v20  ;;  %v4672_v17 = vsel %vm4629_vm2, %v89_v15, %v4667_v16  ;;  %v3906_v20 = vld [vmem:[#allocation3 + $0x390] ss:$24 sps:$4 sm:$0xff]   ;;  %v3965_v61 = vld [vmem:[#allocation3 + $0x12c] ss:$24 sps:$4 sm:$0xff]   ;;  %v3974_v4 = vld [vmem:[#allocation3 + $0x1bc] ss:$24 sps:$4 sm:$0xff]  }
  0x52   :  { %v3957_v58 = vld [vmem:[#allocation3 + $0xc8] ss:$24 sps:$4 sm:$0xff]   ;;  %v3966_v0 = vld [vmem:[#allocation3 + $0x158] ss:$24 sps:$4 sm:$0xff]   ;;  %v3980_v9 = vld [vmem:[#allocation3 + $0x21c] ss:$24 sps:$4 sm:$0xff]  }
  0x53   :  { %v3963_v62 = vld [vmem:[#allocation3 + $0x128] ss:$24 sps:$4 sm:$0xff]   ;;  %v3972_v5 = vld [vmem:[#allocation3 + $0x1b8] ss:$24 sps:$4 sm:$0xff]   ;;  %v3983_v11 = vld [vmem:[#allocation3 + $0x24c] ss:$24 sps:$4 sm:$0xff]  }
  0x54   :  { %1308 = vmatpush1.bf16.msra.mxu0 %v3872_v24  ;;  %v3912_v24 = vld [vmem:[#allocation3 + $0x3f0] ss:$24 sps:$4 sm:$0xff]   ;;  %v3989_v15 = vld [vmem:[#allocation3 + $0x2ac] ss:$24 sps:$4 sm:$0xff]  }
  0x55   :  { %1309 = vmatprep.subr.bf16.mxu0 %v3873_v26  ;;  %v3915_v26 = vld [vmem:[#allocation3 + $0x420] ss:$24 sps:$4 sm:$0xff]  }
  0x56   :  { %v3978_v10 = vld [vmem:[#allocation3 + $0x218] ss:$24 sps:$4 sm:$0xff]   ;;  %v3981_v12 = vld [vmem:[#allocation3 + $0x248] ss:$24 sps:$4 sm:$0xff]  }
  0x58   :  { %1310 = vmatpush1.bf16.msra.mxu0 %v3875_v30  ;;  %v3921_v30 = vld [vmem:[#allocation3 + $0x480] ss:$24 sps:$4 sm:$0xff]  }
  0x59   :  { %1311 = vmatprep.subr.bf16.mxu0 %v3876_v33  ;;  %v3929_v33 = vld [vmem:[#allocation3 + $0x4e4] ss:$24 sps:$4 sm:$0xff]  }
  0x5c   :  { %1312 = vmatpush1.bf16.msra.mxu0 %v3878_v39  ;;  %v3938_v39 = vld [vmem:[#allocation3 + $0x574] ss:$24 sps:$4 sm:$0xff]  }
  0x5d   :  { %1313 = vmatprep.subr.bf16.mxu0 %v3879_v43  ;;  %v3939_v43 = vld [vmem:[#allocation3 + $0x5a0] ss:$24 sps:$4 sm:$0xff]  }
  0x60   :  { %1314 = vmatpush1.bf16.msra.mxu0 %v3881_v48  ;;  %v3945_v48 = vld [vmem:[#allocation3 + $0x8] ss:$24 sps:$4 sm:$0xff]  }
  0x61   :  { %1315 = vmatprep.subr.bf16.mxu0 %v3882_v49  ;;  %v3950_v49 = vld [vmem:[#allocation3 + $0x3c] ss:$24 sps:$4 sm:$0xff]  }
  0x64   :  { %1316 = vmatpush1.bf16.msra.mxu0 %v3884_v52  ;;  %v3948_v52 = vld [vmem:[#allocation3 + $0x38] ss:$24 sps:$4 sm:$0xff]  }
  0x65   :  { %1317 = vmatprep.subr.bf16.mxu0 %v3885_v53  ;;  %v3953_v53 = vld [vmem:[#allocation3 + $0x6c] ss:$24 sps:$4 sm:$0xff]  }
  0x68   :  { %1318 = vmatpush1.bf16.msra.mxu0 %v3887_v54  ;;  %v3951_v54 = vld [vmem:[#allocation3 + $0x68] ss:$24 sps:$4 sm:$0xff]  }
  0x69   :  { %1319 = vmatprep.subr.bf16.mxu0 %v3888_v55  ;;  %v3956_v55 = vld [vmem:[#allocation3 + $0x9c] ss:$24 sps:$4 sm:$0xff]  }
  0x6c   :  { %1320 = vmatpush1.bf16.msra.mxu0 %v3890_v56  ;;  %v3954_v56 = vld [vmem:[#allocation3 + $0x98] ss:$24 sps:$4 sm:$0xff]  }
  0x6d   :  { %1321 = vmatprep.subr.bf16.mxu0 %v3891_v57  ;;  %v3959_v57 = vld [vmem:[#allocation3 + $0xcc] ss:$24 sps:$4 sm:$0xff]  }
  0x70   :  { %1322 = vmatpush1.bf16.msra.mxu0 %v3893_v60  ;;  %v3960_v60 = vld [vmem:[#allocation3 + $0xf8] ss:$24 sps:$4 sm:$0xff]  }
  0x71   :  { %1323 = vmatprep.subr.bf16.mxu0 %v3894_v63  ;;  %v3968_v63 = vld [vmem:[#allocation3 + $0x15c] ss:$24 sps:$4 sm:$0xff]  }
  0x74   :  { %1324 = vmatpush1.bf16.msra.mxu0 %v3896_v1  ;;  %v3971_v1 = vld [vmem:[#allocation3 + $0x18c] ss:$24 sps:$4 sm:$0xff]  }
  0x75   :  { %1344 = vmatprep.subr.bf16.mxu0 %v3899_v3  ;;  %v3969_v3 = vld [vmem:[#allocation3 + $0x188] ss:$24 sps:$4 sm:$0xff]  }
  0x77   :  { %1326 = vmatmul.mubr.bf16.vlgmr.msra.gmra.mrb[0].mxu0 %v4659_v7 }
  0x78   :  { %1345 = vmatpush1.bf16.msra.mxu0 %v3897_v6  ;;  %1335 = vmatprep.mubr.bf16.mxu0 %v4633_v40  ;;  %v3977_v6 = vld [vmem:[#allocation3 + $0x1ec] ss:$24 sps:$4 sm:$0xff]  }
  0x79   :  { %1346 = vmatprep.subr.bf16.mxu0 %v3902_v8  ;;  %v3975_v8 = vld [vmem:[#allocation3 + $0x1e8] ss:$24 sps:$4 sm:$0xff]  }
  0x7c   :  { %1347 = vmatpush1.bf16.msra.mxu0 %v3900_v13  ;;  %v3986_v13 = vld [vmem:[#allocation3 + $0x27c] ss:$24 sps:$4 sm:$0xff]  }
  0x7d   :  { %1348 = vmatprep.subr.bf16.mxu0 %v3905_v14  ;;  %v3984_v14 = vld [vmem:[#allocation3 + $0x278] ss:$24 sps:$4 sm:$0xff]  }
  0x7f   :  { %1336 = vmatmul.mubr.bf16.gmra.mrb[4].mxu0 %v4653_v2 }
  0x80   :  { %1349 = vmatpush1.bf16.msra.mxu0 %v3903_v18  ;;  %1376 = vmatprep.mubr.bf16.mxu0 %v4672_v17  ;;  %v3987_v18 = vld [vmem:[#allocation3 + $0x2a8] ss:$24 sps:$4 sm:$0xff]  }
  0x81   :  { %1350 = vmatprep.subr.bf16.mxu0 %v3908_v19  ;;  %v3992_v19 = vld [vmem:[#allocation3 + $0x2dc] ss:$24 sps:$4 sm:$0xff]  }
  0x84   :  { %1351 = vmatpush1.bf16.msra.mxu0 %v3906_v20  ;;  %v3990_v20 = vld [vmem:[#allocation3 + $0x2d8] ss:$24 sps:$4 sm:$0xff]  }
  0x85   :  { %1352 = vmatprep.subr.bf16.mxu0 %v3911_v21  ;;  %v3995_v21 = vld [vmem:[#allocation3 + $0x30c] ss:$24 sps:$4 sm:$0xff]  }
  0x88   :  { %1353 = vmatpush1.bf16.msra.mxu0 %v3909_v22  ;;  %v3993_v22 = vld [vmem:[#allocation3 + $0x308] ss:$24 sps:$4 sm:$0xff]  }
  0x89   :  { %1354 = vmatprep.subr.bf16.mxu0 %v3914_v23  ;;  %v3998_v23 = vld [vmem:[#allocation3 + $0x33c] ss:$24 sps:$4 sm:$0xff]  }
  0x8c   :  { %1355 = vmatpush1.bf16.msra.mxu0 %v3912_v24  ;;  %v3996_v24 = vld [vmem:[#allocation3 + $0x338] ss:$24 sps:$4 sm:$0xff]  }
  0x8d   :  { %1356 = vmatprep.subr.bf16.mxu0 %v3917_v25  ;;  %v4001_v25 = vld [vmem:[#allocation3 + $0x36c] ss:$24 sps:$4 sm:$0xff]  }
  0x90   :  { %1357 = vmatpush1.bf16.msra.mxu0 %v3915_v26  ;;  %v3999_v26 = vld [vmem:[#allocation3 + $0x368] ss:$24 sps:$4 sm:$0xff]  }
  0x91   :  { %1358 = vmatprep.subr.bf16.mxu0 %v3920_v27  ;;  %v4004_v27 = vld [vmem:[#allocation3 + $0x39c] ss:$24 sps:$4 sm:$0xff]  }
  0x94   :  { %1359 = vmatpush1.bf16.msra.mxu0 %v3918_v28  ;;  %v4002_v28 = vld [vmem:[#allocation3 + $0x398] ss:$24 sps:$4 sm:$0xff]  }
  0x95   :  { %1360 = vmatprep.subr.bf16.mxu0 %v3923_v29  ;;  %v4007_v29 = vld [vmem:[#allocation3 + $0x3cc] ss:$24 sps:$4 sm:$0xff]  }
  0x98   :  { %1361 = vmatpush1.bf16.msra.mxu0 %v3921_v30  ;;  %v4005_v30 = vld [vmem:[#allocation3 + $0x3c8] ss:$24 sps:$4 sm:$0xff]  }
  0x99   :  { %1362 = vmatprep.subr.bf16.mxu0 %v3926_v31  ;;  %v4010_v31 = vld [vmem:[#allocation3 + $0x3fc] ss:$24 sps:$4 sm:$0xff]  }
  0x9c   :  { %1363 = vmatpush1.bf16.msra.mxu0 %v3924_v32  ;;  %v4008_v32 = vld [vmem:[#allocation3 + $0x3f8] ss:$24 sps:$4 sm:$0xff]  }
  0x9d   :  { %1364 = vmatprep.subr.bf16.mxu0 %v3929_v33  ;;  %v4013_v33 = vld [vmem:[#allocation3 + $0x42c] ss:$24 sps:$4 sm:$0xff]  }
  0xa0   :  { %1365 = vmatpush1.bf16.msra.mxu0 %v3927_v34  ;;  %v4011_v34 = vld [vmem:[#allocation3 + $0x428] ss:$24 sps:$4 sm:$0xff]  }
  0xa1   :  { %1366 = vmatprep.subr.bf16.mxu0 %v3932_v35  ;;  %v4016_v35 = vld [vmem:[#allocation3 + $0x45c] ss:$24 sps:$4 sm:$0xff]  }
  0xa4   :  { %1367 = vmatpush1.bf16.msra.mxu0 %v3930_v36  ;;  %v4014_v36 = vld [vmem:[#allocation3 + $0x458] ss:$24 sps:$4 sm:$0xff]  }
  0xa5   :  { %1368 = vmatprep.subr.bf16.mxu0 %v3935_v37  ;;  %v4019_v37 = vld [vmem:[#allocation3 + $0x48c] ss:$24 sps:$4 sm:$0xff]  }
  0xa8   :  { %1369 = vmatpush1.bf16.msra.mxu0 %v3933_v38  ;;  %v4017_v38 = vld [vmem:[#allocation3 + $0x488] ss:$24 sps:$4 sm:$0xff]  }
  0xa9   :  { %1370 = vmatprep.subr.bf16.mxu0 %v3938_v39  ;;  %v4022_v39 = vld [vmem:[#allocation3 + $0x4bc] ss:$24 sps:$4 sm:$0xff]  }
  0xac   :  { %1371 = vmatpush1.bf16.msra.mxu0 %v3936_v41  ;;  %v4020_v41 = vld [vmem:[#allocation3 + $0x4b8] ss:$24 sps:$4 sm:$0xff]  }
  0xad   :  { %1372 = vmatprep.subr.bf16.mxu0 %v3941_v42  ;;  %v4025_v42 = vld [vmem:[#allocation3 + $0x4ec] ss:$24 sps:$4 sm:$0xff]  }
  0xb0   :  { %1373 = vmatpush1.bf16.msra.mxu0 %v3939_v43  ;;  %v4023_v43 = vld [vmem:[#allocation3 + $0x4e8] ss:$24 sps:$4 sm:$0xff]  }
  0xb1   :  { %1374 = vmatprep.subr.bf16.mxu0 %v3944_v45  ;;  %v4028_v45 = vld [vmem:[#allocation3 + $0x51c] ss:$24 sps:$4 sm:$0xff]  }
  0xb4   :  { %1375 = vmatpush1.bf16.msra.mxu0 %v3942_v46  ;;  %v4026_v46 = vld [vmem:[#allocation3 + $0x518] ss:$24 sps:$4 sm:$0xff]  }
  0xb5   :  { %1395 = vmatprep.subr.bf16.mxu0 %v3947_v47  ;;  %v4031_v47 = vld [vmem:[#allocation3 + $0x54c] ss:$24 sps:$4 sm:$0xff]  }
  0xb7   :  { %1377 = vmatmul.mubr.bf16.vlgmr.msra.gmra.mrb[0].mxu0 %v4647_v51 }
  0xb8   :  { %1396 = vmatpush1.bf16.msra.mxu0 %v3945_v48  ;;  %1386 = vmatprep.mubr.bf16.mxu0 %v4667_v16  ;;  %v4029_v48 = vld [vmem:[#allocation3 + $0x548] ss:$24 sps:$4 sm:$0xff]  }
  0xb9   :  { %1397 = vmatprep.subr.bf16.mxu0 %v3950_v49  ;;  %v4034_v49 = vld [vmem:[#allocation3 + $0x57c] ss:$24 sps:$4 sm:$0xff]  }
  0xbc   :  { %1398 = vmatpush1.bf16.msra.mxu0 %v3948_v52  ;;  %v4032_v52 = vld [vmem:[#allocation3 + $0x578] ss:$24 sps:$4 sm:$0xff]  }
  0xbd   :  { %1399 = vmatprep.subr.bf16.mxu0 %v3953_v53  ;;  %v4037_v53 = vld [vmem:[#allocation3 + $0x5ac] ss:$24 sps:$4 sm:$0xff]  }
  0xbf   :  { %1387 = vmatmul.mubr.bf16.gmra.mrb[4].mxu0 %v4642_v50 }
  0xc0   :  { %1400 = vmatpush1.bf16.msra.mxu0 %v3951_v54  ;;  %1427 = vmatprep.mubr.bf16.mxu0 %v4638_v44  ;;  %v4035_v54 = vld [vmem:[#allocation3 + $0x5a8] ss:$24 sps:$4 sm:$0xff]  }
  0xc1   :  { %1401 = vmatprep.subr.bf16.mxu0 %v3956_v55  ;;  %v4040_v55 = vld [vmem:[#allocation3 + $0x5dc] ss:$24 sps:$4 sm:$0xff]  }
  0xc4   :  { %1402 = vmatpush1.bf16.msra.mxu0 %v3954_v56  ;;  %v4038_v56 = vld [vmem:[#allocation3 + $0x5d8] ss:$24 sps:$4 sm:$0xff]  }
  0xc5   :  { %1403 = vmatprep.subr.bf16.mxu0 %v3959_v57  ;;  %v4043_v57 = vld [vmem:[#allocation3 + $0x14] ss:$24 sps:$4 sm:$0xff]  }
  0xc8   :  { %1404 = vmatpush1.bf16.msra.mxu0 %v3957_v58  ;;  %v4041_v58 = vld [vmem:[#allocation3 + $0x10] ss:$24 sps:$4 sm:$0xff]  }
  0xc9   :  { %1405 = vmatprep.subr.bf16.mxu0 %v3962_v59  ;;  %v4046_v59 = vld [vmem:[#allocation3 + $0x44] ss:$24 sps:$4 sm:$0xff]  }
  0xcc   :  { %1406 = vmatpush1.bf16.msra.mxu0 %v3960_v60  ;;  %v4044_v60 = vld [vmem:[#allocation3 + $0x40] ss:$24 sps:$4 sm:$0xff]  }
  0xcd   :  { %1407 = vmatprep.subr.bf16.mxu0 %v3965_v61  ;;  %v4049_v61 = vld [vmem:[#allocation3 + $0x74] ss:$24 sps:$4 sm:$0xff]  }
  0xd0   :  { %1408 = vmatpush1.bf16.msra.mxu0 %v3963_v62  ;;  %v4047_v62 = vld [vmem:[#allocation3 + $0x70] ss:$24 sps:$4 sm:$0xff]  }
  0xd1   :  { %1409 = vmatprep.subr.bf16.mxu0 %v3968_v63  ;;  %v4052_v63 = vld [vmem:[#allocation3 + $0xa4] ss:$24 sps:$4 sm:$0xff]  }
  0xd4   :  { %1410 = vmatpush1.bf16.msra.mxu0 %v3966_v0  ;;  %v4050_v0 = vld [vmem:[#allocation3 + $0xa0] ss:$24 sps:$4 sm:$0xff]  }
  0xd5   :  { %1411 = vmatprep.subr.bf16.mxu0 %v3971_v1  ;;  %v4055_v1 = vld [vmem:[#allocation3 + $0xd4] ss:$24 sps:$4 sm:$0xff]  }
  0xd8   :  { %1412 = vmatpush1.bf16.msra.mxu0 %v3969_v3  ;;  %v4053_v3 = vld [vmem:[#allocation3 + $0xd0] ss:$24 sps:$4 sm:$0xff]  }
  0xd9   :  { %1413 = vmatprep.subr.bf16.mxu0 %v3974_v4  ;;  %v4058_v4 = vld [vmem:[#allocation3 + $0x104] ss:$24 sps:$4 sm:$0xff]  }
  0xdc   :  { %1414 = vmatpush1.bf16.msra.mxu0 %v3972_v5  ;;  %v4056_v5 = vld [vmem:[#allocation3 + $0x100] ss:$24 sps:$4 sm:$0xff]  }
  0xdd   :  { %1415 = vmatprep.subr.bf16.mxu0 %v3977_v6  ;;  %v4061_v6 = vld [vmem:[#allocation3 + $0x134] ss:$24 sps:$4 sm:$0xff]  }
  0xe0   :  { %1416 = vmatpush1.bf16.msra.mxu0 %v3975_v8  ;;  %v4059_v8 = vld [vmem:[#allocation3 + $0x130] ss:$24 sps:$4 sm:$0xff]  }
  0xe1   :  { %1417 = vmatprep.subr.bf16.mxu0 %v3980_v9  ;;  %v4064_v9 = vld [vmem:[#allocation3 + $0x164] ss:$24 sps:$4 sm:$0xff]  }
  0xe4   :  { %1418 = vmatpush1.bf16.msra.mxu0 %v3978_v10  ;;  %v4062_v10 = vld [vmem:[#allocation3 + $0x160] ss:$24 sps:$4 sm:$0xff]  }
  0xe5   :  { %1419 = vmatprep.subr.bf16.mxu0 %v3983_v11  ;;  %v4067_v11 = vld [vmem:[#allocation3 + $0x194] ss:$24 sps:$4 sm:$0xff]  }
  0xe8   :  { %1420 = vmatpush1.bf16.msra.mxu0 %v3981_v12  ;;  %v4070_v12 = vld [vmem:[#allocation3 + $0x1c4] ss:$24 sps:$4 sm:$0xff]  }
  0xe9   :  { %1421 = vmatprep.subr.bf16.mxu0 %v3986_v13  ;;  %v4068_v13 = vld [vmem:[#allocation3 + $0x1c0] ss:$24 sps:$4 sm:$0xff]  }
  0xec   :  { %1422 = vmatpush1.bf16.msra.mxu0 %v3984_v14  ;;  %v4073_v14 = vld [vmem:[#allocation3 + $0x1f4] ss:$24 sps:$4 sm:$0xff]  }
  0xed   :  { %1423 = vmatprep.subr.bf16.mxu0 %v3989_v15  ;;  %v4071_v15 = vld [vmem:[#allocation3 + $0x1f0] ss:$24 sps:$4 sm:$0xff]  }
  0xf0   :  { %1424 = vmatpush1.bf16.msra.mxu0 %v3987_v18  ;;  %v4076_v18 = vld [vmem:[#allocation3 + $0x224] ss:$24 sps:$4 sm:$0xff]  }
  0xf1   :  { %1425 = vmatprep.subr.bf16.mxu0 %v3992_v19  ;;  %v4074_v19 = vld [vmem:[#allocation3 + $0x220] ss:$24 sps:$4 sm:$0xff]  }
  0xf4   :  { %1426 = vmatpush1.bf16.msra.mxu0 %v3990_v20  ;;  %v4079_v20 = vld [vmem:[#allocation3 + $0x254] ss:$24 sps:$4 sm:$0xff]  }
  0xf5   :  { %1446 = vmatprep.subr.bf16.mxu0 %v3995_v21  ;;  %v4077_v21 = vld [vmem:[#allocation3 + $0x250] ss:$24 sps:$4 sm:$0xff]  }
  0xf7   :  { %1428 = vmatmul.mubr.bf16.vlgmr.msra.gmra.mrb[8].mxu0 %v4659_v7 }
  0xf8   :  { %1447 = vmatpush1.bf16.msra.mxu0 %v3993_v22  ;;  %1437 = vmatprep.mubr.bf16.mxu0 %v4633_v40  ;;  %v4082_v22 = vld [vmem:[#allocation3 + $0x284] ss:$24 sps:$4 sm:$0xff]  }
  0xf9   :  { %1448 = vmatprep.subr.bf16.mxu0 %v3998_v23  ;;  %v4080_v23 = vld [vmem:[#allocation3 + $0x280] ss:$24 sps:$4 sm:$0xff]  }
  0xfc   :  { %1449 = vmatpush1.bf16.msra.mxu0 %v3996_v24  ;;  %v4085_v24 = vld [vmem:[#allocation3 + $0x2b4] ss:$24 sps:$4 sm:$0xff]  }
  0xfd   :  { %1450 = vmatprep.subr.bf16.mxu0 %v4001_v25  ;;  %v4083_v25 = vld [vmem:[#allocation3 + $0x2b0] ss:$24 sps:$4 sm:$0xff]  }
  0xff   :  { %1438 = vmatmul.mubr.bf16.gmra.mrb[12].mxu0 %v4653_v2 }
 0x100   :  { %1451 = vmatpush1.bf16.msra.mxu0 %v3999_v26  ;;  %1478 = vmatprep.mubr.bf16.mxu0 %v4672_v17  ;;  %v4088_v26 = vld [vmem:[#allocation3 + $0x2e4] ss:$24 sps:$4 sm:$0xff]  }
 0x101   :  { %1452 = vmatprep.subr.bf16.mxu0 %v4004_v27  ;;  %v4086_v27 = vld [vmem:[#allocation3 + $0x2e0] ss:$24 sps:$4 sm:$0xff]  }
 0x104   :  { %1453 = vmatpush1.bf16.msra.mxu0 %v4002_v28  ;;  %v4091_v28 = vld [vmem:[#allocation3 + $0x314] ss:$24 sps:$4 sm:$0xff]  }
 0x105   :  { %1454 = vmatprep.subr.bf16.mxu0 %v4007_v29  ;;  %v4089_v29 = vld [vmem:[#allocation3 + $0x310] ss:$24 sps:$4 sm:$0xff]  }
 0x108   :  { %1455 = vmatpush1.bf16.msra.mxu0 %v4005_v30  ;;  %v4094_v30 = vld [vmem:[#allocation3 + $0x344] ss:$24 sps:$4 sm:$0xff]  }
 0x109   :  { %1456 = vmatprep.subr.bf16.mxu0 %v4010_v31  ;;  %v4092_v31 = vld [vmem:[#allocation3 + $0x340] ss:$24 sps:$4 sm:$0xff]  }
 0x10c   :  { %1457 = vmatpush1.bf16.msra.mxu0 %v4008_v32  ;;  %v4097_v32 = vld [vmem:[#allocation3 + $0x374] ss:$24 sps:$4 sm:$0xff]  }
 0x10d   :  { %1458 = vmatprep.subr.bf16.mxu0 %v4013_v33  ;;  %v4095_v33 = vld [vmem:[#allocation3 + $0x370] ss:$24 sps:$4 sm:$0xff]  }
 0x110   :  { %1459 = vmatpush1.bf16.msra.mxu0 %v4011_v34  ;;  %v4100_v34 = vld [vmem:[#allocation3 + $0x3a4] ss:$24 sps:$4 sm:$0xff]  }
 0x111   :  { %1460 = vmatprep.subr.bf16.mxu0 %v4016_v35  ;;  %v4098_v35 = vld [vmem:[#allocation3 + $0x3a0] ss:$24 sps:$4 sm:$0xff]  }
 0x114   :  { %1461 = vmatpush1.bf16.msra.mxu0 %v4014_v36  ;;  %v4103_v36 = vld [vmem:[#allocation3 + $0x3d4] ss:$24 sps:$4 sm:$0xff]  }
 0x115   :  { %1462 = vmatprep.subr.bf16.mxu0 %v4019_v37  ;;  %v4106_v37 = vld [vmem:[#allocation3 + $0x404] ss:$24 sps:$4 sm:$0xff]  }
 0x118   :  { %1463 = vmatpush1.bf16.msra.mxu0 %v4017_v38  ;;  %v4109_v38 = vld [vmem:[#allocation3 + $0x434] ss:$24 sps:$4 sm:$0xff]  }
 0x119   :  { %1464 = vmatprep.subr.bf16.mxu0 %v4022_v39 }
 0x11c   :  { %1465 = vmatpush1.bf16.msra.mxu0 %v4020_v41 }
 0x11d   :  { %1466 = vmatprep.subr.bf16.mxu0 %v4025_v42 }
 0x120   :  { %1467 = vmatpush1.bf16.msra.mxu0 %v4023_v43 }
 0x121   :  { %1468 = vmatprep.subr.bf16.mxu0 %v4028_v45  ;;  %v4110_v45 = vld [vmem:[#allocation3 + $0x460] ss:$24 sps:$4 sm:$0xff]  }
 0x124   :  { %1469 = vmatpush1.bf16.msra.mxu0 %v4026_v46  ;;  %v4115_v46 = vld [vmem:[#allocation3 + $0x494] ss:$24 sps:$4 sm:$0xff]  }
 0x125   :  { %1470 = vmatprep.subr.bf16.mxu0 %v4031_v47 }
 0x128   :  { %1471 = vmatpush1.bf16.msra.mxu0 %v4029_v48 }
 0x129   :  { %1472 = vmatprep.subr.bf16.mxu0 %v4034_v49 }
 0x12c   :  { %1473 = vmatpush1.bf16.msra.mxu0 %v4032_v52  ;;  %v4113_v52 = vld [vmem:[#allocation3 + $0x490] ss:$24 sps:$4 sm:$0xff]  }
 0x12d   :  { %1474 = vmatprep.subr.bf16.mxu0 %v4037_v53 }
 0x130   :  { %1475 = vmatpush1.bf16.msra.mxu0 %v4035_v54  ;;  %v4118_v54 = vld [vmem:[#allocation3 + $0x4c4] ss:$24 sps:$4 sm:$0xff]  }
 0x131   :  { %1476 = vmatprep.subr.bf16.mxu0 %v4040_v55  ;;  %v4116_v55 = vld [vmem:[#allocation3 + $0x4c0] ss:$24 sps:$4 sm:$0xff]  }
 0x134   :  { %1477 = vmatpush1.bf16.msra.mxu0 %v4038_v56  ;;  %v4121_v56 = vld [vmem:[#allocation3 + $0x4f4] ss:$24 sps:$4 sm:$0xff]  }
 0x135   :  { %1497 = vmatprep.subr.bf16.mxu0 %v4043_v57  ;;  %v4119_v57 = vld [vmem:[#allocation3 + $0x4f0] ss:$24 sps:$4 sm:$0xff]  }
 0x137   :  { %1479 = vmatmul.mubr.bf16.vlgmr.msra.gmra.mrb[8].mxu0 %v4647_v51 }
 0x138   :  { %1498 = vmatpush1.bf16.msra.mxu0 %v4041_v58  ;;  %1488 = vmatprep.mubr.bf16.mxu0 %v4667_v16  ;;  %v4124_v58 = vld [vmem:[#allocation3 + $0x524] ss:$24 sps:$4 sm:$0xff]  }
 0x139   :  { %1499 = vmatprep.subr.bf16.mxu0 %v4046_v59  ;;  %v4122_v59 = vld [vmem:[#allocation3 + $0x520] ss:$24 sps:$4 sm:$0xff]  }
 0x13c   :  { %1500 = vmatpush1.bf16.msra.mxu0 %v4044_v60  ;;  %v4127_v60 = vld [vmem:[#allocation3 + $0x554] ss:$24 sps:$4 sm:$0xff]  }
 0x13d   :  { %1501 = vmatprep.subr.bf16.mxu0 %v4049_v61  ;;  %v4125_v61 = vld [vmem:[#allocation3 + $0x550] ss:$24 sps:$4 sm:$0xff]  }
 0x13f   :  { %1489 = vmatmul.mubr.bf16.gmra.mrb[12].mxu0 %v4642_v50 }
 0x140   :  { %1502 = vmatpush1.bf16.msra.mxu0 %v4047_v62  ;;  %1529 = vmatprep.mubr.bf16.mxu0 %v4638_v44  ;;  %v4065_v44 = vld [vmem:[#allocation3 + $0x190] ss:$24 sps:$4 sm:$0xff]   ;;  %v4130_v62 = vld [vmem:[#allocation3 + $0x584] ss:$24 sps:$4 sm:$0xff]  }
 0x141   :  { %1503 = vmatprep.subr.bf16.mxu0 %v4052_v63  ;;  %v4128_v63 = vld [vmem:[#allocation3 + $0x580] ss:$24 sps:$4 sm:$0xff]  }
 0x144   :  { %1504 = vmatpush1.bf16.msra.mxu0 %v4050_v0  ;;  %v4133_v0 = vld [vmem:[#allocation3 + $0x5b4] ss:$24 sps:$4 sm:$0xff]  }
 0x145   :  { %1505 = vmatprep.subr.bf16.mxu0 %v4055_v1  ;;  %v4131_v1 = vld [vmem:[#allocation3 + $0x5b0] ss:$24 sps:$4 sm:$0xff]  }
 0x148   :  { %1506 = vmatpush1.bf16.msra.mxu0 %v4053_v3  ;;  %v4136_v3 = vld [vmem:[#allocation3 + $0x5e4] ss:$24 sps:$4 sm:$0xff]  }
 0x149   :  { %1507 = vmatprep.subr.bf16.mxu0 %v4058_v4  ;;  %v4137_v4 = vld [vmem:[#allocation7 + $0x4] ss:$16 sps:$4 sm:$0xff]  }
 0x14a   :  { %2410 = vmatprep.subr.bf16.mxu1 %v4137_v4 }
 0x14c   :  { %1508 = vmatpush1.bf16.msra.mxu0 %v4056_v5  ;;  %v4139_v5 = vld [vmem:[#allocation7] ss:$16 sps:$4 sm:$0xff]  }
 0x14d   :  { %1509 = vmatprep.subr.bf16.mxu0 %v4061_v6  ;;  %v4140_v6 = vld [vmem:[#allocation7 + $0x24] ss:$16 sps:$4 sm:$0xff]   ;;  %2411 = vmatpush1.bf16.msra.mxu1 %v4139_v5 }
 0x14e   :  { %2412 = vmatprep.subr.bf16.mxu1 %v4140_v6 }
 0x150   :  { %1510 = vmatpush1.bf16.msra.mxu0 %v4059_v8  ;;  %v4134_v8 = vld [vmem:[#allocation3 + $0x5e0] ss:$24 sps:$4 sm:$0xff]  }
 0x151   :  { %1511 = vmatprep.subr.bf16.mxu0 %v4064_v9  ;;  %v4142_v9 = vld [vmem:[#allocation7 + $0x20] ss:$16 sps:$4 sm:$0xff]  }
 0x152   :  { %2413 = vmatpush1.bf16.msra.mxu1 %v4142_v9 }
 0x154   :  { %1512 = vmatpush1.bf16.msra.mxu0 %v4062_v10  ;;  %v4143_v10 = vld [vmem:[#allocation7 + $0x44] ss:$16 sps:$4 sm:$0xff]  }
 0x155   :  { %1513 = vmatprep.subr.bf16.mxu0 %v4067_v11  ;;  %v4145_v11 = vld [vmem:[#allocation7 + $0x40] ss:$16 sps:$4 sm:$0xff]   ;;  %2414 = vmatprep.subr.bf16.mxu1 %v4143_v10 }
 0x156   :  { %2415 = vmatpush1.bf16.msra.mxu1 %v4145_v11  ;;  %v4181_v11 = vld [vmem:[#allocation7 + $0x1c0] ss:$16 sps:$4 sm:$0xff]  }
 0x158   :  { %1514 = vmatpush1.bf16.msra.mxu0 %v4065_v44  ;;  %v4146_v44 = vld [vmem:[#allocation7 + $0x64] ss:$16 sps:$4 sm:$0xff]  }
 0x159   :  { %1515 = vmatprep.subr.bf16.mxu0 %v4070_v12  ;;  %v4148_v12 = vld [vmem:[#allocation7 + $0x60] ss:$16 sps:$4 sm:$0xff]   ;;  %2416 = vmatprep.subr.bf16.mxu1 %v4146_v44 }
 0x15a   :  { %2417 = vmatpush1.bf16.msra.mxu1 %v4148_v12 }
 0x15c   :  { %1516 = vmatpush1.bf16.msra.mxu0 %v4068_v13  ;;  %v4149_v13 = vld [vmem:[#allocation7 + $0x84] ss:$16 sps:$4 sm:$0xff]  }
 0x15d   :  { %1517 = vmatprep.subr.bf16.mxu0 %v4073_v14  ;;  %v4151_v14 = vld [vmem:[#allocation7 + $0x80] ss:$16 sps:$4 sm:$0xff]   ;;  %2418 = vmatprep.subr.bf16.mxu1 %v4149_v13 }
 0x15e   :  { %2419 = vmatpush1.bf16.msra.mxu1 %v4151_v14  ;;  %v4182_v14 = vld [vmem:[#allocation7 + $0x1e4] ss:$16 sps:$4 sm:$0xff]  }
 0x160   :  { %1518 = vmatpush1.bf16.msra.mxu0 %v4071_v15  ;;  %v4152_v15 = vld [vmem:[#allocation7 + $0xa4] ss:$16 sps:$4 sm:$0xff]  }
 0x161   :  { %1519 = vmatprep.subr.bf16.mxu0 %v4076_v18  ;;  %v4154_v18 = vld [vmem:[#allocation7 + $0xa0] ss:$16 sps:$4 sm:$0xff]   ;;  %2420 = vmatprep.subr.bf16.mxu1 %v4152_v15 }
 0x162   :  { %2421 = vmatpush1.bf16.msra.mxu1 %v4154_v18 }
 0x164   :  { %1520 = vmatpush1.bf16.msra.mxu0 %v4074_v19  ;;  %v4155_v19 = vld [vmem:[#allocation7 + $0xc4] ss:$16 sps:$4 sm:$0xff]  }
 0x165   :  { %1521 = vmatprep.subr.bf16.mxu0 %v4079_v20  ;;  %2422 = vmatprep.subr.bf16.mxu1 %v4155_v19  ;;  %v4158_v20 = vld [vmem:[#allocation7 + $0xe4] ss:$16 sps:$4 sm:$0xff]  }
 0x168   :  { %1522 = vmatpush1.bf16.msra.mxu0 %v4077_v21  ;;  %v4161_v21 = vld [vmem:[#allocation7 + $0x104] ss:$16 sps:$4 sm:$0xff]  }
 0x169   :  { %1523 = vmatprep.subr.bf16.mxu0 %v4082_v22  ;;  %v4163_v22 = vld [vmem:[#allocation7 + $0x100] ss:$16 sps:$4 sm:$0xff]  }
 0x16c   :  { %1524 = vmatpush1.bf16.msra.mxu0 %v4080_v23 }
 0x16d   :  { %1525 = vmatprep.subr.bf16.mxu0 %v4085_v24 }
 0x170   :  { %1526 = vmatpush1.bf16.msra.mxu0 %v4083_v25 }
 0x171   :  { %1527 = vmatprep.subr.bf16.mxu0 %v4088_v26 }
 0x174   :  { %1528 = vmatpush1.bf16.msra.mxu0 %v4086_v27  ;;  %v4164_v27 = vld [vmem:[#allocation7 + $0x124] ss:$16 sps:$4 sm:$0xff]  }
 0x175   :  { %1548 = vmatprep.subr.bf16.mxu0 %v4091_v28 }
 0x177   :  { %1530 = vmatmul.mubr.bf16.vlgmr.msra.gmra.mrb[16].mxu0 %v4659_v7  ;;  %v4101_v7 = vld [vmem:[#allocation3 + $0x3d0] ss:$24 sps:$4 sm:$0xff]  }
 0x178   :  { %1549 = vmatpush1.bf16.msra.mxu0 %v4089_v29  ;;  %1539 = vmatprep.mubr.bf16.mxu0 %v4633_v40  ;;  %v4104_v40 = vld [vmem:[#allocation3 + $0x400] ss:$24 sps:$4 sm:$0xff]  }
 0x179   :  { %1550 = vmatprep.subr.bf16.mxu0 %v4094_v30  ;;  %v4166_v29 = vld [vmem:[#allocation7 + $0x120] ss:$16 sps:$4 sm:$0xff]  }
 0x17c   :  { %1551 = vmatpush1.bf16.msra.mxu0 %v4092_v31 }
 0x17d   :  { %1552 = vmatprep.subr.bf16.mxu0 %v4097_v32 }
 0x17f   :  { %1540 = vmatmul.mubr.bf16.gmra.mrb[20].mxu0 %v4653_v2  ;;  %v4107_v2 = vld [vmem:[#allocation3 + $0x430] ss:$24 sps:$4 sm:$0xff]  }
 0x180   :  { %1553 = vmatpush1.bf16.msra.mxu0 %v4095_v33  ;;  %1580 = vmatprep.mubr.bf16.mxu0 %v4672_v17  ;;  %v4112_v17 = vld [vmem:[#allocation3 + $0x464] ss:$24 sps:$4 sm:$0xff]   ;;  %v1666_v33 = vlaneseq }
 0x181   :  { %1554 = vmatprep.subr.bf16.mxu0 %v4100_v34 }
 0x184   :  { %1555 = vmatpush1.bf16.msra.mxu0 %v4098_v35  ;;  %v4167_v35 = vld [vmem:[#allocation7 + $0x144] ss:$16 sps:$4 sm:$0xff]  }
 0x185   :  { %1556 = vmatprep.subr.bf16.mxu0 %v4103_v36 }
 0x188   :  { %1557 = vmatpush1.bf16.msra.mxu0 %v4101_v7  ;;  %v4169_v7 = vld [vmem:[#allocation7 + $0x140] ss:$16 sps:$4 sm:$0xff]  }
 0x189   :  { %1558 = vmatprep.subr.bf16.mxu0 %v4106_v37 }
 0x18a   :  { %v4692_v39 = vpop.f32.mrb[0].mxu0 }
 0x18b   :  { %v4694_v41 = vpop.f32.mrb[1].mxu0  ;;  %v1599_v24 = vmul.f32 %v4692_v39, %v4692_v39 }
 0x18c   :  { %v4696_v42 = vpop.f32.mrb[2].mxu0  ;;  %1559 = vmatpush1.bf16.msra.mxu0 %v4104_v40  ;;  %v4725_v40 = vshrl.u32 %v1666_v33, 7 }
 0x18d   :  { %v4698_v43 = vpop.f32.mrb[3].mxu0  ;;  %1560 = vmatprep.subr.bf16.mxu0 %v4109_v38  ;;  %v1602_v30 = vmul.f32 %v4696_v42, %v4696_v42 }
 0x190   :  { %1561 = vmatpush1.bf16.msra.mxu0 %v4107_v2 }
 0x191   :  { %1562 = vmatprep.subr.bf16.mxu0 %v4112_v17 }
 0x192   :  { %v4700_v47 = vpop.f32.mrb[4].mxu0 }
 0x193   :  { %v4702_v48 = vpop.f32.mrb[5].mxu0  ;;  %v1605_v17 = vmul.f32 %v4700_v47, %v4700_v47 }
 0x194   :  { %v1392_v49 = vpop.f32.mrb[6].mxu0  ;;  %1563 = vmatpush1.bf16.msra.mxu0 %v4110_v45  ;;  %v1662_v45 = vld [vmem:[%s4906_s3] sm:$0x7] }
 0x195   :  { %v1393_v53 = vpop.f32.mrb[7].mxu0  ;;  %1564 = vmatprep.subr.bf16.mxu0 %v4115_v46  ;;  %v1663_v46 = vstv %s4903_s0 }
 0x196   :  { %v4170_v53 = vld [vmem:[#allocation7 + $0x164] ss:$16 sps:$4 sm:$0xff]  }
 0x198   :  { %1565 = vmatpush1.bf16.msra.mxu0 %v4113_v52 }
 0x199   :  { %1566 = vmatprep.subr.bf16.mxu0 %v4118_v54 }
 0x19c   :  { %1567 = vmatpush1.bf16.msra.mxu0 %v4116_v55  ;;  %v4172_v55 = vld [vmem:[#allocation7 + $0x160] ss:$16 sps:$4 sm:$0xff]  }
 0x19d   :  { %1568 = vmatprep.subr.bf16.mxu0 %v4121_v56 }
 0x1a0   :  { %1569 = vmatpush1.bf16.msra.mxu0 %v4119_v57  ;;  %v4735_v57 = vmul.f32 %v1663_v46, %v1662_v45 }
 0x1a1   :  { %1570 = vmatprep.subr.bf16.mxu0 %v4124_v58  ;;  %v1668_v58 = vsub.s32 0, %v4725_v40 }
 0x1a4   :  { %1571 = vmatpush1.bf16.msra.mxu0 %v4122_v59  ;;  %v4173_v59 = vld [vmem:[#allocation7 + $0x184] ss:$16 sps:$4 sm:$0xff]  }
 0x1a5   :  { %1572 = vmatprep.subr.bf16.mxu0 %v4127_v60 }
 0x1a8   :  { %1573 = vmatpush1.bf16.msra.mxu0 %v4125_v61  ;;  %v4175_v61 = vld [vmem:[#allocation7 + $0x180] ss:$16 sps:$4 sm:$0xff]  }
 0x1a9   :  { %1574 = vmatprep.subr.bf16.mxu0 %v4130_v62  ;;  %v1669_v62 = vrot.slane %v4735_v57, %v1668_v58 }
 0x1ac   :  { %1575 = vmatpush1.bf16.msra.mxu0 %v4128_v63 }
 0x1ad   :  { %1576 = vmatprep.subr.bf16.mxu0 %v4133_v0  ;;  %v4176_v0 = vld [vmem:[#allocation7 + $0x1a4] ss:$16 sps:$4 sm:$0xff]  }
 0x1b0   :  { %1577 = vmatpush1.bf16.msra.mxu0 %v4131_v1 }
 0x1b1   :  { %1578 = vmatprep.subr.bf16.mxu0 %v4136_v3  ;;  %v4178_v3 = vld [vmem:[#allocation7 + $0x1a0] ss:$16 sps:$4 sm:$0xff]  }
 0x1b4   :  { %1579 = vmatpush1.bf16.msra.mxu0 %v4134_v8  ;;  %v4179_v8 = vld [vmem:[#allocation7 + $0x1c4] ss:$16 sps:$4 sm:$0xff]  }
 0x1b7   :  { %1581 = vmatmul.mubr.bf16.vlgmr.msra.gmra.mrb[16].mxu0 %v4647_v51  ;;  %v4157_v51 = vld [vmem:[#allocation7 + $0xc0] ss:$16 sps:$4 sm:$0xff]  }
 0x1b8   :  { %1590 = vmatprep.mubr.bf16.mxu0 %v4667_v16  ;;  %2423 = vmatpush1.bf16.msra.mxu1 %v4157_v51  ;;  %v4160_v16 = vld [vmem:[#allocation7 + $0xe0] ss:$16 sps:$4 sm:$0xff]  }
 0x1b9   :  { %2424 = vmatprep.subr.bf16.mxu1 %v4158_v20  ;;  %v4184_v20 = vld [vmem:[#allocation7 + $0x1e0] ss:$16 sps:$4 sm:$0xff]  }
 0x1bc   :  { %2425 = vmatpush1.bf16.msra.mxu1 %v4160_v16 }
 0x1bd   :  { %2426 = vmatprep.subr.bf16.mxu1 %v4161_v21 }
 0x1bf   :  { %1591 = vmatmul.mubr.bf16.gmra.mrb[20].mxu0 %v4642_v50 }
 0x1c0   :  { %2427 = vmatpush1.bf16.msra.mxu1 %v4163_v22 }
 0x1c1   :  { %2428 = vmatprep.subr.bf16.mxu1 %v4164_v27 }
 0x1c4   :  { %2429 = vmatpush1.bf16.msra.mxu1 %v4166_v29 }
 0x1c5   :  { %2430 = vmatprep.subr.bf16.mxu1 %v4167_v35 }
 0x1c8   :  { %2431 = vmatpush1.bf16.msra.mxu1 %v4169_v7 }
 0x1c9   :  { %2432 = vmatprep.subr.bf16.mxu1 %v4170_v53 }
 0x1cc   :  { %2433 = vmatpush1.bf16.msra.mxu1 %v4172_v55 }
 0x1cd   :  { %2434 = vmatprep.subr.bf16.mxu1 %v4173_v59 }
 0x1d0   :  { %2435 = vmatpush1.bf16.msra.mxu1 %v4175_v61 }
 0x1d1   :  { %2436 = vmatprep.subr.bf16.mxu1 %v4176_v0 }
 0x1d4   :  { %2437 = vmatpush1.bf16.msra.mxu1 %v4178_v3  ;;  %v1672_v3 = vsub.s32 1, %v4725_v40 }
 0x1d5   :  { %2438 = vmatprep.subr.bf16.mxu1 %v4179_v8 }
 0x1d8   :  { %2439 = vmatpush1.bf16.msra.mxu1 %v4181_v11 }
 0x1d9   :  { %2440 = vmatprep.subr.bf16.mxu1 %v4182_v14 }
 0x1dc   :  { %2441 = vmatpush1.bf16.msra.mxu1 %v4184_v20 }
 0x20a   :  { %v4707_v23 = vpop.f32.mrb[8].mxu0 }
 0x20b   :  { %v4709_v50 = vpop.f32.mrb[9].mxu0  ;;  %v1601_v33 = vmul.f32 %v4707_v23, %v4707_v23 }
 0x20c   :  { %v1608_v25 = vmul.f32 %v4709_v50, %v4709_v50  ;;  %v4715_v26 = vpop.f32.mrb[10].mxu0 }
 0x20d   :  { %v4717_v28 = vpop.f32.mrb[11].mxu0 }
 0x20e   :  { %v1617_v31 = vadd.f32 %v1608_v25, %v1599_v24  ;;  %v1611_v32 = vmul.f32 %v4717_v28, %v4717_v28  ;;  %v4187_v24 = vld [vmem:[#allocation7 + $0x204] ss:$16 sps:$4 sm:$0xff]  }
 0x20f   :  { %2461 = vmatprep.subr.bf16.mxu1 %v4187_v24 }
 0x210   :  { %vm1626_vm3 = vcmp.gt.f32.partialorder %v1617_v31, 0.0  ;;  %v1620_v34 = vadd.f32 %v1611_v32, %v1602_v30 }
 0x211   :  { %v1635_v36 = vsel %vm1626_vm3, %v1617_v31, 1.0 }
 0x212   :  { %4425 = vrsqrt.f32 %v1635_v36  ;;  %vm1629_vm4 = vcmp.gt.f32.partialorder %v1620_v34, 0.0  ;;  %v4723_v37 = vpop.f32.mrb[12].mxu0 }
 0x213   :  { %v1638_v38 = vsel %vm1629_vm4, %v1620_v34, 1.0  ;;  %v1492_v2 = vpop.f32.mrb[13].mxu0  ;;  %v1607_v61 = vmul.f32 %v4723_v37, %v4723_v37 }
 0x214   :  { %4427 = vrsqrt.f32 %v1638_v38  ;;  %v1614_v49 = vmul.f32 %v1492_v2, %v1492_v2  ;;  %v1494_v52 = vpop.f32.mrb[14].mxu0 }
 0x215   :  { %v1495_v54 = vpop.f32.mrb[15].mxu0 }
 0x216   :  { %v1623_v56 = vadd.f32 %v1614_v49, %v1605_v17 }
 0x218   :  { %vm1632_vm5 = vcmp.gt.f32.partialorder %v1623_v56, 0.0 }
 0x219   :  { %v1641_v60 = vsel %vm1632_vm5, %v1623_v56, 1.0 }
 0x21a   :  { %4429 = vrsqrt.f32 %v1641_v60 }
 0x21c   :  { %v4426_v63 = vpop.eup %4425 }
 0x21d   :  { %v1653_v1 = vmul.f32 %v4426_v63, %v1617_v31 }
 0x21e   :  { %v4428_v4 = vpop.eup %4427 }
 0x21f   :  { %v1681_v5 = vsub.f32 %v1653_v1, %v1669_v62  ;;  %v1656_v6 = vmul.f32 %v4428_v4, %v1620_v34 }
 0x221   :  { %v1690_v9 = vmax.f32 %v1681_v5, 0.0  ;;  %v1684_v10 = vsub.f32 %v1656_v6, %v1669_v62  ;;  %v1676_v5 = vsub.s32 2, %v4725_v40 }
 0x223   :  { %v1699_v44 = vmul.f32 %v4426_v63, %v1690_v9  ;;  %v1693_v12 = vmax.f32 %v1684_v10, 0.0  ;;  %v1673_v9 = vrot.slane %v4735_v57, %v1672_v3  ;;  %v1677_v11 = vrot.slane %v4735_v57, %v1676_v5  ;;  %v4191_v5 = vld [vmem:[#allocation7 + $0x240] ss:$16 sps:$4 sm:$0xff]  }
 0x224   :  { %v4430_v13 = vpop.eup %4429 }
 0x225   :  { %v1708_v15 = vmul.f32 %v1699_v44, %v4692_v39  ;;  %v1723_v18 = vmul.f32 %v1699_v44, %v4709_v50  ;;  %v1702_v19 = vmul.f32 %v4428_v4, %v1693_v12  ;;  %v1659_v51 = vmul.f32 %v4430_v13, %v1623_v56 }
 0x226   :  { %v1606_v56 = vmul.f32 %v4702_v48, %v4702_v48 }
 0x227   :  { %v1711_v16 = vmul.f32 %v1702_v19, %v4696_v42  ;;  %v1726_v21 = vmul.f32 %v1702_v19, %v4717_v28  ;;  %v1687_v22 = vsub.f32 %v1659_v51, %v1669_v62  ;;  %v1600_v42 = vmul.f32 %v4694_v41, %v4694_v41 }
 0x229   :  { %v4743_v25 = vpack.c.bf16 %v1711_v16, %v1708_v15  ;;  %v4745_v27 = vpack.c.bf16 %v1726_v21, %v1723_v18  ;;  %v1696_v29 = vmax.f32 %v1687_v22, 0.0 }
 0x22b   :  { %v1705_v39 = vmul.f32 %v4430_v13, %v1696_v29 }
 0x22d   :  { %v4747_v30 = vmul.f32 %v1705_v39, %v1492_v2  ;;  %v4750_v50 = vmul.f32 %v1705_v39, %v4700_v47  ;;  %v1603_v47 = vmul.f32 %v4698_v43, %v4698_v43  ;;  %v1604_v2 = vmul.f32 %v4715_v26, %v4715_v26 }
 0x28a   :  { %v4752_v31 = vpop.f32.mrb[16].mxu0 }
 0x28b   :  { %v1609_v28 = vmul.f32 %v4752_v31, %v4752_v31  ;;  %v4758_v32 = vpop.f32.mrb[17].mxu0 }
 0x28c   :  { %v1610_v34 = vmul.f32 %v4758_v32, %v4758_v32  ;;  %v4764_v35 = vpop.f32.mrb[18].mxu0 }
 0x28d   :  { %v1618_v36 = vadd.f32 %v1609_v28, %v1600_v42  ;;  %v1612_v7 = vmul.f32 %v4764_v35, %v4764_v35  ;;  %v4770_v38 = vpop.f32.mrb[19].mxu0 }
 0x28e   :  { %v1619_v17 = vadd.f32 %v1610_v34, %v1601_v33  ;;  %v1613_v45 = vmul.f32 %v4770_v38, %v4770_v38 }
 0x28f   :  { %vm1627_vm6 = vcmp.gt.f32.partialorder %v1618_v36, 0.0  ;;  %v1621_v46 = vadd.f32 %v1612_v7, %v1603_v47 }
 0x290   :  { %v1636_v49 = vsel %vm1627_vm6, %v1618_v36, 1.0  ;;  %vm1628_vm7 = vcmp.gt.f32.partialorder %v1619_v17, 0.0  ;;  %v1622_v52 = vadd.f32 %v1613_v45, %v1604_v2 }
 0x291   :  { %4431 = vrsqrt.f32 %v1636_v49  ;;  %v1637_v53 = vsel %vm1628_vm7, %v1619_v17, 1.0  ;;  %vm1630_vm8 = vcmp.gt.f32.partialorder %v1621_v46, 0.0 }
 0x292   :  { %4433 = vrsqrt.f32 %v1637_v53  ;;  %v1639_v54 = vsel %vm1630_vm8, %v1621_v46, 1.0  ;;  %vm1631_vm9 = vcmp.gt.f32.partialorder %v1622_v52, 0.0  ;;  %v4776_v55 = vpop.f32.mrb[20].mxu0 }
 0x293   :  { %4435 = vrsqrt.f32 %v1639_v54  ;;  %v1640_v58 = vsel %vm1631_vm9, %v1622_v52, 1.0  ;;  %v1615_v59 = vmul.f32 %v4776_v55, %v4776_v55  ;;  %v4782_v60 = vpop.f32.mrb[21].mxu0 }
 0x294   :  { %4437 = vrsqrt.f32 %v1640_v58  ;;  %v1616_v62 = vmul.f32 %v4782_v60, %v4782_v60  ;;  %v1596_v63 = vpop.f32.mrb[22].mxu0  ;;  %v4185_v58 = vld [vmem:[#allocation7 + $0x200] ss:$16 sps:$4 sm:$0xff]  }
 0x295   :  { %v1624_v0 = vadd.f32 %v1615_v59, %v1606_v56  ;;  %v1597_v1 = vpop.f32.mrb[23].mxu0 }
 0x296   :  { %v1625_v4 = vadd.f32 %v1616_v62, %v1607_v61  ;;  %v4193_v1 = vld [vmem:[#allocation7 + $0x244] ss:$16 sps:$4 sm:$0xff]  }
 0x297   :  { %vm1633_vm10 = vcmp.gt.f32.partialorder %v1624_v0, 0.0 }
 0x298   :  { %v1642_v6 = vsel %vm1633_vm10, %v1624_v0, 1.0  ;;  %vm1634_vm11 = vcmp.gt.f32.partialorder %v1625_v4, 0.0 }
 0x299   :  { %4439 = vrsqrt.f32 %v1642_v6  ;;  %v1643_v8 = vsel %vm1634_vm11, %v1625_v4, 1.0  ;;  %v4520_v6 = vmov 0  }
 0x29a   :  { %4441 = vrsqrt.f32 %v1643_v8  ;;  %v4197_v8 = vld [vmem:[#allocation7 + $0x280] ss:$16 sps:$4 sm:$0xff]  }
 0x29b   :  { %v4432_v10 = vpop.eup %4431 }
 0x29c   :  { %v4434_v44 = vpop.eup %4433  ;;  %v1654_v12 = vmul.f32 %v4432_v10, %v1618_v36 }
 0x29d   :  { %v4436_v13 = vpop.eup %4435  ;;  %v1655_v14 = vmul.f32 %v4434_v44, %v1619_v17 }
 0x29e   :  { %v4438_v15 = vpop.eup %4437  ;;  %v1682_v18 = vsub.f32 %v1654_v12, %v1673_v9  ;;  %v1657_v19 = vmul.f32 %v4436_v13, %v1621_v46  ;;  %v4206_v12 = vld [vmem:[#allocation7 + $0x2e0] ss:$16 sps:$4 sm:$0xff]  }
 0x29f   :  { %v1683_v51 = vsub.f32 %v1655_v14, %v1677_v11  ;;  %v1658_v40 = vmul.f32 %v4438_v15, %v1622_v52  ;;  %v4209_v14 = vld [vmem:[#allocation7 + $0x8] ss:$16 sps:$4 sm:$0xff]  }
 0x2a0   :  { %v1691_v20 = vmax.f32 %v1682_v18, 0.0  ;;  %v1685_v16 = vsub.f32 %v1657_v19, %v1673_v9  ;;  %v4212_v18 = vld [vmem:[#allocation7 + $0x28] ss:$16 sps:$4 sm:$0xff]   ;;  %v4217_v19 = vld [vmem:[#allocation7 + $0x4c] ss:$16 sps:$4 sm:$0xff]  }
 0x2a1   :  { %v1692_v21 = vmax.f32 %v1683_v51, 0.0  ;;  %v1686_v22 = vsub.f32 %v1658_v40, %v1677_v11  ;;  %v4215_v51 = vld [vmem:[#allocation7 + $0x48] ss:$16 sps:$4 sm:$0xff]  }
 0x2a2   :  { %v1700_v24 = vmul.f32 %v4432_v10, %v1691_v20  ;;  %v1694_v29 = vmax.f32 %v1685_v16, 0.0  ;;  %v4200_v10 = vld [vmem:[#allocation7 + $0x2a0] ss:$16 sps:$4 sm:$0xff]   ;;  %v4220_v20 = vld [vmem:[#allocation7 + $0x6c] ss:$16 sps:$4 sm:$0xff]  }
 0x2a3   :  { %v4440_v39 = vpop.eup %4439  ;;  %v1701_v42 = vmul.f32 %v4434_v44, %v1692_v21  ;;  %v1695_v28 = vmax.f32 %v1686_v22, 0.0  ;;  %v4208_v44 = vld [vmem:[#allocation7 + $0x2e4] ss:$16 sps:$4 sm:$0xff]   ;;  %v4218_v16 = vld [vmem:[#allocation7 + $0x68] ss:$16 sps:$4 sm:$0xff]  }
 0x2a4   :  { %v4442_v33 = vpop.eup %4441  ;;  %v1709_v57 = vmul.f32 %v1700_v24, %v4694_v41  ;;  %v1724_v34 = vmul.f32 %v1700_v24, %v4752_v31  ;;  %v1703_v47 = vmul.f32 %v4436_v13, %v1694_v29  ;;  %v1660_v36 = vmul.f32 %v4440_v39, %v1624_v0  ;;  %v4211_v13 = vld [vmem:[#allocation7 + $0xc] ss:$16 sps:$4 sm:$0xff]   ;;  %v4221_v22 = vld [vmem:[#allocation7 + $0x88] ss:$16 sps:$4 sm:$0xff]  }
 0x2a5   :  { %v1710_v7 = vmul.f32 %v1701_v42, %v4707_v23  ;;  %v1725_v2 = vmul.f32 %v1701_v42, %v4758_v32  ;;  %v1704_v17 = vmul.f32 %v4438_v15, %v1695_v28  ;;  %v1661_v45 = vmul.f32 %v4442_v33, %v1625_v4  ;;  %v4214_v15 = vld [vmem:[#allocation7 + $0x2c] ss:$16 sps:$4 sm:$0xff]   ;;  %v4224_v29 = vld [vmem:[#allocation7 + $0xa8] ss:$16 sps:$4 sm:$0xff]  }
 0x2a6   :  { %v1712_v46 = vmul.f32 %v1703_v47, %v4698_v43  ;;  %v1727_v49 = vmul.f32 %v1703_v47, %v4764_v35  ;;  %v1688_v52 = vsub.f32 %v1660_v36, %v1673_v9  ;;  %v4190_v43 = vld [vmem:[#allocation7 + $0x224] ss:$16 sps:$4 sm:$0xff]   ;;  %v4223_v21 = vld [vmem:[#allocation7 + $0x8c] ss:$16 sps:$4 sm:$0xff]   ;;  %v4227_v42 = vld [vmem:[#allocation7 + $0xc8] ss:$16 sps:$4 sm:$0xff]  }
 0x2a7   :  { %v1713_v53 = vmul.f32 %v1704_v17, %v4715_v26  ;;  %v1728_v54 = vmul.f32 %v1704_v17, %v4770_v38  ;;  %v1689_v41 = vsub.f32 %v1661_v45, %v1677_v11  ;;  %v4188_v38 = vld [vmem:[#allocation7 + $0x220] ss:$16 sps:$4 sm:$0xff]   ;;  %v4202_v9 = vld [vmem:[#allocation7 + $0x2a4] ss:$16 sps:$4 sm:$0xff]   ;;  %v4226_v24 = vld [vmem:[#allocation7 + $0xac] ss:$16 sps:$4 sm:$0xff]  }
 0x2a8   :  { %v1697_v56 = vmax.f32 %v1688_v52, 0.0  ;;  %v4800_v31 = vpack.c.bf16 %v1727_v49, %v1724_v34  ;;  %v4802_v59 = vpack.c.bf16 %v1712_v46, %v1709_v57  ;;  %v4203_v11 = vld [vmem:[#allocation7 + $0x2c0] ss:$16 sps:$4 sm:$0xff]   ;;  %v4232_v28 = vld [vmem:[#allocation7 + $0xec] ss:$16 sps:$4 sm:$0xff]  }
 0x2a9   :  { %v4804_v23 = vpack.c.bf16 %v1713_v53, %v1710_v7  ;;  %v4806_v32 = vpack.c.bf16 %v1728_v54, %v1725_v2  ;;  %v1698_v61 = vmax.f32 %v1689_v41, 0.0  ;;  %v4235_v57 = vld [vmem:[#allocation7 + $0x10c] ss:$16 sps:$4 sm:$0xff]   ;;  %v4233_v34 = vld [vmem:[#allocation7 + $0x108] ss:$16 sps:$4 sm:$0xff]  }
 0x2aa   :  { %v1706_v62 = vmul.f32 %v4440_v39, %v1697_v56  ;;  %2442 = vmatprep.mubr.bf16.mxu1 %v4800_v31  ;;  %v4229_v39 = vld [vmem:[#allocation7 + $0xcc] ss:$16 sps:$4 sm:$0xff]   ;;  %v4236_v36 = vld [vmem:[#allocation7 + $0x128] ss:$16 sps:$4 sm:$0xff]  }
 0x2ab   :  { %v1707_v35 = vmul.f32 %v4442_v33, %v1698_v61  ;;  %2443 = vmatmul.mubr.bf16.vlgmr.msra.gmra.mrb[0].mxu1 %v4745_v27  ;;  %v4230_v33 = vld [vmem:[#allocation7 + $0xe8] ss:$16 sps:$4 sm:$0xff]   ;;  %v4238_v47 = vld [vmem:[#allocation7 + $0x12c] ss:$16 sps:$4 sm:$0xff]  }
 0x2ac   :  { %v1730_v26 = vmul.f32 %v1706_v62, %v4776_v55  ;;  %2462 = vmatpush1.bf16.msra.mxu1 %v4185_v58  ;;  %v4812_v63 = vmul.f32 %v1706_v62, %v4702_v48  ;;  %v4823_v55 = vpack.c.bf16 %v4747_v30, %v4747_v30  ;;  %v4196_v48 = vld [vmem:[#allocation7 + $0x264] ss:$16 sps:$4 sm:$0xff]   ;;  %v4241_v7 = vld [vmem:[#allocation7 + $0x14c] ss:$16 sps:$4 sm:$0xff]   ;;  %v4239_v2 = vld [vmem:[#allocation7 + $0x148] ss:$16 sps:$4 sm:$0xff]  }
 0x2ad   :  { %v1731_v0 = vmul.f32 %v1707_v35, %v4782_v60  ;;  %2463 = vmatprep.subr.bf16.mxu1 %v4190_v43  ;;  %v4816_v3 = vmul.f32 %v1707_v35, %v4723_v37  ;;  %v4194_v60 = vld [vmem:[#allocation7 + $0x260] ss:$16 sps:$4 sm:$0xff]   ;;  %v4199_v37 = vld [vmem:[#allocation7 + $0x284] ss:$16 sps:$4 sm:$0xff]   ;;  %v4244_v17 = vld [vmem:[#allocation7 + $0x16c] ss:$16 sps:$4 sm:$0xff]  }
 0x2ae   :  { %v4818_v4 = vpack.c.bf16 %v1730_v26, %v1730_v26  ;;  %v4205_v30 = vld [vmem:[#allocation7 + $0x2c4] ss:$16 sps:$4 sm:$0xff]   ;;  %v4242_v45 = vld [vmem:[#allocation7 + $0x168] ss:$16 sps:$4 sm:$0xff]   ;;  %v4247_v46 = vld [vmem:[#allocation7 + $0x18c] ss:$16 sps:$4 sm:$0xff]  }
 0x2af   :  { %v4829_v40 = vpack.c.bf16 %v1731_v0, %v1731_v0  ;;  %v4245_v49 = vld [vmem:[#allocation7 + $0x188] ss:$16 sps:$4 sm:$0xff]   ;;  %v4250_v52 = vld [vmem:[#allocation7 + $0x1ac] ss:$16 sps:$4 sm:$0xff]  }
 0x2b0   :  { %2464 = vmatpush1.bf16.msra.mxu1 %v4188_v38  ;;  %2452 = vmatprep.mubr.bf16.mxu1 %v4818_v4  ;;  %v4248_v53 = vld [vmem:[#allocation7 + $0x1a8] ss:$16 sps:$4 sm:$0xff]   ;;  %v4253_v54 = vld [vmem:[#allocation7 + $0x1cc] ss:$16 sps:$4 sm:$0xff]  }
 0x2b1   :  { %2465 = vmatprep.subr.bf16.mxu1 %v4193_v1  ;;  %v4251_v41 = vld [vmem:[#allocation7 + $0x1c8] ss:$16 sps:$4 sm:$0xff]   ;;  %v4256_v56 = vld [vmem:[#allocation7 + $0x1ec] ss:$16 sps:$4 sm:$0xff]  }
 0x2b2   :  { %v4259_v58 = vld [vmem:[#allocation7 + $0x20c] ss:$16 sps:$4 sm:$0xff]   ;;  %v4257_v61 = vld [vmem:[#allocation7 + $0x208] ss:$16 sps:$4 sm:$0xff]  }
 0x2b3   :  { %2453 = vmatmul.mubr.bf16.gmra.mrb[4].mxu1 %v4823_v55  ;;  %v4262_v43 = vld [vmem:[#allocation7 + $0x22c] ss:$16 sps:$4 sm:$0xff]   ;;  %v4260_v62 = vld [vmem:[#allocation7 + $0x228] ss:$16 sps:$4 sm:$0xff]  }
 0x2b4   :  { %2466 = vmatpush1.bf16.msra.mxu1 %v4191_v5  ;;  %2493 = vmatprep.mubr.bf16.mxu1 %v4520_v6  ;;  %v4265_v35 = vld [vmem:[#allocation7 + $0x24c] ss:$16 sps:$4 sm:$0xff]   ;;  %v4263_v26 = vld [vmem:[#allocation7 + $0x248] ss:$16 sps:$4 sm:$0xff]  }
 0x2b5   :  { %2467 = vmatprep.subr.bf16.mxu1 %v4196_v48  ;;  %v4268_v38 = vld [vmem:[#allocation7 + $0x26c] ss:$16 sps:$4 sm:$0xff]   ;;  %v4266_v0 = vld [vmem:[#allocation7 + $0x268] ss:$16 sps:$4 sm:$0xff]  }
 0x2b6   :  { %v4271_v1 = vld [vmem:[#allocation7 + $0x28c] ss:$16 sps:$4 sm:$0xff]   ;;  %v4272_v5 = vld [vmem:[#allocation7 + $0x2a8] ss:$16 sps:$4 sm:$0xff]  }
 0x2b7   :  { %v4277_v48 = vld [vmem:[#allocation7 + $0x2cc] ss:$16 sps:$4 sm:$0xff]  }
 0x2b8   :  { %2468 = vmatpush1.bf16.msra.mxu1 %v4194_v60  ;;  %v4275_v60 = vld [vmem:[#allocation7 + $0x2c8] ss:$16 sps:$4 sm:$0xff]  }
 0x2b9   :  { %2469 = vmatprep.subr.bf16.mxu1 %v4199_v37  ;;  %v4280_v37 = vld [vmem:[#allocation7 + $0x2ec] ss:$16 sps:$4 sm:$0xff]  }
 0x2bc   :  { %2470 = vmatpush1.bf16.msra.mxu1 %v4197_v8  ;;  %v4283_v8 = vld [vmem:[#allocation5 + $0x4] ss:$16 sps:$4 sm:$0xff]  }
 0x2bd   :  { %2471 = vmatprep.subr.bf16.mxu1 %v4202_v9  ;;  %v4281_v9 = vld [vmem:[#allocation5] ss:$16 sps:$4 sm:$0xff]  }
 0x2c0   :  { %2472 = vmatpush1.bf16.msra.mxu1 %v4200_v10  ;;  %v4286_v10 = vld [vmem:[#allocation5 + $0x24] ss:$16 sps:$4 sm:$0xff]  }
 0x2c1   :  { %2473 = vmatprep.subr.bf16.mxu1 %v4205_v30  ;;  %v4284_v30 = vld [vmem:[#allocation5 + $0x20] ss:$16 sps:$4 sm:$0xff]  }
 0x2c4   :  { %2474 = vmatpush1.bf16.msra.mxu1 %v4203_v11  ;;  %v4289_v11 = vld [vmem:[#allocation5 + $0x44] ss:$16 sps:$4 sm:$0xff]  }
 0x2c5   :  { %2475 = vmatprep.subr.bf16.mxu1 %v4208_v44  ;;  %v4287_v44 = vld [vmem:[#allocation5 + $0x40] ss:$16 sps:$4 sm:$0xff]  }
 0x2c8   :  { %2476 = vmatpush1.bf16.msra.mxu1 %v4206_v12  ;;  %v4292_v12 = vld [vmem:[#allocation5 + $0x64] ss:$16 sps:$4 sm:$0xff]  }
 0x2c9   :  { %2512 = vmatprep.subr.bf16.mxu1 %v4211_v13  ;;  %v4290_v13 = vld [vmem:[#allocation5 + $0x60] ss:$16 sps:$4 sm:$0xff]  }
 0x2cb   :  { %2494 = vmatmul.mubr.bf16.vlgmr.msra.gmra.mrb[0].mxu1 %v4806_v32 }
 0x2cc   :  { %2513 = vmatpush1.bf16.msra.mxu1 %v4209_v14  ;;  %2503 = vmatprep.mubr.bf16.mxu1 %v4520_v6  ;;  %v4295_v14 = vld [vmem:[#allocation5 + $0x84] ss:$16 sps:$4 sm:$0xff]  }
 0x2cd   :  { %2514 = vmatprep.subr.bf16.mxu1 %v4214_v15  ;;  %v4298_v15 = vld [vmem:[#allocation5 + $0xa4] ss:$16 sps:$4 sm:$0xff]  }
 0x2d0   :  { %2515 = vmatpush1.bf16.msra.mxu1 %v4212_v18  ;;  %v4296_v18 = vld [vmem:[#allocation5 + $0xa0] ss:$16 sps:$4 sm:$0xff]  }
 0x2d1   :  { %2516 = vmatprep.subr.bf16.mxu1 %v4217_v19  ;;  %v4301_v19 = vld [vmem:[#allocation5 + $0xc4] ss:$16 sps:$4 sm:$0xff]  }
 0x2d3   :  { %2504 = vmatmul.mubr.bf16.gmra.mrb[4].mxu1 %v4829_v40 }
 0x2d4   :  { %2517 = vmatpush1.bf16.msra.mxu1 %v4215_v51  ;;  %2544 = vmatprep.mubr.bf16.mxu1 %v4800_v31  ;;  %v4254_v31 = vld [vmem:[#allocation7 + $0x1e8] ss:$16 sps:$4 sm:$0xff]   ;;  %v4299_v51 = vld [vmem:[#allocation5 + $0xc0] ss:$16 sps:$4 sm:$0xff]  }
 0x2d5   :  { %2518 = vmatprep.subr.bf16.mxu1 %v4220_v20  ;;  %v4304_v20 = vld [vmem:[#allocation5 + $0xe4] ss:$16 sps:$4 sm:$0xff]  }
 0x2d8   :  { %2519 = vmatpush1.bf16.msra.mxu1 %v4218_v16  ;;  %v4307_v16 = vld [vmem:[#allocation5 + $0x104] ss:$16 sps:$4 sm:$0xff]  }
 0x2d9   :  { %2520 = vmatprep.subr.bf16.mxu1 %v4223_v21  ;;  %v4305_v21 = vld [vmem:[#allocation5 + $0x100] ss:$16 sps:$4 sm:$0xff]  }
 0x2dc   :  { %2521 = vmatpush1.bf16.msra.mxu1 %v4221_v22  ;;  %v4310_v22 = vld [vmem:[#allocation5 + $0x124] ss:$16 sps:$4 sm:$0xff]  }
 0x2dd   :  { %2522 = vmatprep.subr.bf16.mxu1 %v4226_v24  ;;  %v4308_v24 = vld [vmem:[#allocation5 + $0x120] ss:$16 sps:$4 sm:$0xff]  }
 0x2e0   :  { %2523 = vmatpush1.bf16.msra.mxu1 %v4224_v29  ;;  %v4313_v29 = vld [vmem:[#allocation5 + $0x144] ss:$16 sps:$4 sm:$0xff]  }
 0x2e1   :  { %2524 = vmatprep.subr.bf16.mxu1 %v4229_v39  ;;  %v4311_v39 = vld [vmem:[#allocation5 + $0x140] ss:$16 sps:$4 sm:$0xff]  }
 0x2e4   :  { %2525 = vmatpush1.bf16.msra.mxu1 %v4227_v42  ;;  %v4316_v42 = vld [vmem:[#allocation5 + $0x164] ss:$16 sps:$4 sm:$0xff]  }
 0x2e5   :  { %2526 = vmatprep.subr.bf16.mxu1 %v4232_v28  ;;  %v4314_v28 = vld [vmem:[#allocation5 + $0x160] ss:$16 sps:$4 sm:$0xff]  }
 0x2e8   :  { %2527 = vmatpush1.bf16.msra.mxu1 %v4230_v33  ;;  %v4319_v33 = vld [vmem:[#allocation5 + $0x184] ss:$16 sps:$4 sm:$0xff]  }
 0x2e9   :  { %2528 = vmatprep.subr.bf16.mxu1 %v4235_v57  ;;  %v4317_v57 = vld [vmem:[#allocation5 + $0x180] ss:$16 sps:$4 sm:$0xff]  }
 0x2ec   :  { %2529 = vmatpush1.bf16.msra.mxu1 %v4233_v34  ;;  %v4322_v34 = vld [vmem:[#allocation5 + $0x1a4] ss:$16 sps:$4 sm:$0xff]  }
 0x2ed   :  { %2530 = vmatprep.subr.bf16.mxu1 %v4238_v47  ;;  %v4320_v47 = vld [vmem:[#allocation5 + $0x1a0] ss:$16 sps:$4 sm:$0xff]  }
 0x2f0   :  { %2531 = vmatpush1.bf16.msra.mxu1 %v4236_v36  ;;  %v4325_v36 = vld [vmem:[#allocation5 + $0x1c4] ss:$16 sps:$4 sm:$0xff]  }
 0x2f1   :  { %2532 = vmatprep.subr.bf16.mxu1 %v4241_v7  ;;  %v4323_v7 = vld [vmem:[#allocation5 + $0x1c0] ss:$16 sps:$4 sm:$0xff]  }
 0x2f4   :  { %2533 = vmatpush1.bf16.msra.mxu1 %v4239_v2  ;;  %v4328_v2 = vld [vmem:[#allocation5 + $0x1e4] ss:$16 sps:$4 sm:$0xff]  }
 0x2f5   :  { %2534 = vmatprep.subr.bf16.mxu1 %v4244_v17  ;;  %v4326_v17 = vld [vmem:[#allocation5 + $0x1e0] ss:$16 sps:$4 sm:$0xff]  }
 0x2f8   :  { %2535 = vmatpush1.bf16.msra.mxu1 %v4242_v45  ;;  %v4331_v45 = vld [vmem:[#allocation5 + $0x204] ss:$16 sps:$4 sm:$0xff]  }
 0x2f9   :  { %2536 = vmatprep.subr.bf16.mxu1 %v4247_v46  ;;  %v4329_v46 = vld [vmem:[#allocation5 + $0x200] ss:$16 sps:$4 sm:$0xff]  }
 0x2fc   :  { %2537 = vmatpush1.bf16.msra.mxu1 %v4245_v49  ;;  %v4334_v49 = vld [vmem:[#allocation5 + $0x224] ss:$16 sps:$4 sm:$0xff]  }
 0x2fd   :  { %2538 = vmatprep.subr.bf16.mxu1 %v4250_v52  ;;  %v4843_v52 = vpack.c.bf16 %v4812_v63, %v4812_v63  ;;  %v4338_v63 = vld [vmem:[#allocation5 + $0x260] ss:$16 sps:$4 sm:$0xff]  }
 0x300   :  { %2539 = vmatpush1.bf16.msra.mxu1 %v4248_v53  ;;  %v4332_v53 = vld [vmem:[#allocation5 + $0x220] ss:$16 sps:$4 sm:$0xff]  }
 0x301   :  { %2540 = vmatprep.subr.bf16.mxu1 %v4253_v54  ;;  %v4337_v54 = vld [vmem:[#allocation5 + $0x244] ss:$16 sps:$4 sm:$0xff]  }
 0x304   :  { %2541 = vmatpush1.bf16.msra.mxu1 %v4251_v41  ;;  %v4335_v41 = vld [vmem:[#allocation5 + $0x240] ss:$16 sps:$4 sm:$0xff]  }
 0x305   :  { %2542 = vmatprep.subr.bf16.mxu1 %v4256_v56  ;;  %v4849_v56 = vpack.c.bf16 %v4750_v50, %v4750_v50  ;;  %v4347_v50 = vld [vmem:[#allocation5 + $0x2c0] ss:$16 sps:$4 sm:$0xff]  }
 0x308   :  { %2543 = vmatpush1.bf16.msra.mxu1 %v4254_v31  ;;  %v4340_v31 = vld [vmem:[#allocation5 + $0x264] ss:$16 sps:$4 sm:$0xff]  }
 0x309   :  { %2563 = vmatprep.subr.bf16.mxu1 %v4259_v58  ;;  %v4343_v58 = vld [vmem:[#allocation5 + $0x284] ss:$16 sps:$4 sm:$0xff]  }
 0x30b   :  { %2545 = vmatmul.mubr.bf16.vlgmr.msra.gmra.mrb[8].mxu1 %v4745_v27  ;;  %v4269_v27 = vld [vmem:[#allocation7 + $0x288] ss:$16 sps:$4 sm:$0xff]  }
 0x30c   :  { %2554 = vmatprep.mubr.bf16.mxu1 %v4818_v4  ;;  %2564 = vmatpush1.bf16.msra.mxu1 %v4257_v61  ;;  %v4274_v4 = vld [vmem:[#allocation7 + $0x2ac] ss:$16 sps:$4 sm:$0xff]   ;;  %v4341_v61 = vld [vmem:[#allocation5 + $0x280] ss:$16 sps:$4 sm:$0xff]  }
 0x30d   :  { %2565 = vmatprep.subr.bf16.mxu1 %v4262_v43  ;;  %v4346_v43 = vld [vmem:[#allocation5 + $0x2a4] ss:$16 sps:$4 sm:$0xff]  }
 0x310   :  { %2566 = vmatpush1.bf16.msra.mxu1 %v4260_v62  ;;  %v4344_v62 = vld [vmem:[#allocation5 + $0x2a0] ss:$16 sps:$4 sm:$0xff]  }
 0x311   :  { %2567 = vmatprep.subr.bf16.mxu1 %v4265_v35  ;;  %v4349_v35 = vld [vmem:[#allocation5 + $0x2c4] ss:$16 sps:$4 sm:$0xff]  }
 0x313   :  { %2555 = vmatmul.mubr.bf16.gmra.mrb[12].mxu1 %v4823_v55  ;;  %v4278_v55 = vld [vmem:[#allocation7 + $0x2e8] ss:$16 sps:$4 sm:$0xff]  }
 0x314   :  { %2568 = vmatpush1.bf16.msra.mxu1 %v4263_v26  ;;  %2595 = vmatprep.mubr.bf16.mxu1 %v4520_v6  ;;  %v4352_v26 = vld [vmem:[#allocation5 + $0x2e4] ss:$16 sps:$4 sm:$0xff]  }
 0x315   :  { %2569 = vmatprep.subr.bf16.mxu1 %v4268_v38  ;;  %v4350_v38 = vld [vmem:[#allocation5 + $0x2e0] ss:$16 sps:$4 sm:$0xff]  }
 0x318   :  { %2570 = vmatpush1.bf16.msra.mxu1 %v4266_v0  ;;  %v4355_v0 = vld [vmem:[#allocation5 + $0xc] ss:$16 sps:$4 sm:$0xff]  }
 0x319   :  { %2571 = vmatprep.subr.bf16.mxu1 %v4271_v1  ;;  %v4353_v1 = vld [vmem:[#allocation5 + $0x8] ss:$16 sps:$4 sm:$0xff]  }
 0x31c   :  { %2572 = vmatpush1.bf16.msra.mxu1 %v4269_v27  ;;  %v4358_v27 = vld [vmem:[#allocation5 + $0x2c] ss:$16 sps:$4 sm:$0xff]  }
 0x31d   :  { %2573 = vmatprep.subr.bf16.mxu1 %v4274_v4  ;;  %v4356_v4 = vld [vmem:[#allocation5 + $0x28] ss:$16 sps:$4 sm:$0xff]  }
 0x320   :  { %2574 = vmatpush1.bf16.msra.mxu1 %v4272_v5  ;;  %v4361_v5 = vld [vmem:[#allocation5 + $0x4c] ss:$16 sps:$4 sm:$0xff]  }
 0x321   :  { %2575 = vmatprep.subr.bf16.mxu1 %v4277_v48  ;;  %v4359_v48 = vld [vmem:[#allocation5 + $0x48] ss:$16 sps:$4 sm:$0xff]  }
 0x324   :  { %2576 = vmatpush1.bf16.msra.mxu1 %v4275_v60  ;;  %v4857_v60 = vpack.c.bf16 %v4816_v3, %v4816_v3  ;;  %v4371_v3 = vld [vmem:[#allocation5 + $0xc8] ss:$16 sps:$4 sm:$0xff]  }
 0x325   :  { %2577 = vmatprep.subr.bf16.mxu1 %v4280_v37  ;;  %v4364_v37 = vld [vmem:[#allocation5 + $0x6c] ss:$16 sps:$4 sm:$0xff]  }
 0x328   :  { %2578 = vmatpush1.bf16.msra.mxu1 %v4278_v55  ;;  %v4362_v55 = vld [vmem:[#allocation5 + $0x68] ss:$16 sps:$4 sm:$0xff]  }
 0x329   :  { %3094 = vmatprep.subr.bf16.mxu1 %v4283_v8  ;;  %v4367_v8 = vld [vmem:[#allocation5 + $0x8c] ss:$16 sps:$4 sm:$0xff]  }
 0x32b   :  { %2596 = vmatmul.mubr.bf16.vlgmr.msra.gmra.mrb[8].mxu1 %v4806_v32  ;;  %v4293_v32 = vld [vmem:[#allocation5 + $0x80] ss:$16 sps:$4 sm:$0xff]  }
 0x32c   :  { %3095 = vmatpush1.bf16.msra.mxu1 %v4281_v9  ;;  %2605 = vmatprep.mubr.bf16.mxu1 %v4520_v6  ;;  %v4365_v9 = vld [vmem:[#allocation5 + $0x88] ss:$16 sps:$4 sm:$0xff]  }
 0x32d   :  { %3096 = vmatprep.subr.bf16.mxu1 %v4286_v10  ;;  %v4370_v10 = vld [vmem:[#allocation5 + $0xac] ss:$16 sps:$4 sm:$0xff]  }
 0x330   :  { %3097 = vmatpush1.bf16.msra.mxu1 %v4284_v30  ;;  %v4368_v30 = vld [vmem:[#allocation5 + $0xa8] ss:$16 sps:$4 sm:$0xff]  }
 0x331   :  { %3098 = vmatprep.subr.bf16.mxu1 %v4289_v11  ;;  %v4373_v11 = vld [vmem:[#allocation5 + $0xcc] ss:$16 sps:$4 sm:$0xff]  }
 0x333   :  { %2606 = vmatmul.mubr.bf16.gmra.mrb[12].mxu1 %v4829_v40  ;;  %v4302_v40 = vld [vmem:[#allocation5 + $0xe0] ss:$16 sps:$4 sm:$0xff]  }
 0x334   :  { %3099 = vmatpush1.bf16.msra.mxu1 %v4287_v44  ;;  %3126 = vmatprep.mubr.bf16.mxu1 %v4802_v59  ;;  %v4376_v44 = vld [vmem:[#allocation5 + $0xec] ss:$16 sps:$4 sm:$0xff]  }
 0x335   :  { %3100 = vmatprep.subr.bf16.mxu1 %v4292_v12  ;;  %v4374_v12 = vld [vmem:[#allocation5 + $0xe8] ss:$16 sps:$4 sm:$0xff]  }
 0x338   :  { %3101 = vmatpush1.bf16.msra.mxu1 %v4290_v13  ;;  %v4379_v13 = vld [vmem:[#allocation5 + $0x10c] ss:$16 sps:$4 sm:$0xff]  }
 0x339   :  { %3102 = vmatprep.subr.bf16.mxu1 %v4295_v14  ;;  %v4382_v14 = vld [vmem:[#allocation5 + $0x12c] ss:$16 sps:$4 sm:$0xff]  }
 0x33c   :  { %3103 = vmatpush1.bf16.msra.mxu1 %v4293_v32  ;;  %v4380_v32 = vld [vmem:[#allocation5 + $0x128] ss:$16 sps:$4 sm:$0xff]  }
 0x33d   :  { %3104 = vmatprep.subr.bf16.mxu1 %v4298_v15  ;;  %v4385_v15 = vld [vmem:[#allocation5 + $0x14c] ss:$16 sps:$4 sm:$0xff]  }
 0x340   :  { %3105 = vmatpush1.bf16.msra.mxu1 %v4296_v18  ;;  %v4383_v18 = vld [vmem:[#allocation5 + $0x148] ss:$16 sps:$4 sm:$0xff]  }
 0x341   :  { %3106 = vmatprep.subr.bf16.mxu1 %v4301_v19  ;;  %v4388_v19 = vld [vmem:[#allocation5 + $0x16c] ss:$16 sps:$4 sm:$0xff]  }
 0x344   :  { %3107 = vmatpush1.bf16.msra.mxu1 %v4299_v51  ;;  %v4386_v51 = vld [vmem:[#allocation5 + $0x168] ss:$16 sps:$4 sm:$0xff]  }
 0x345   :  { %3108 = vmatprep.subr.bf16.mxu1 %v4304_v20  ;;  %v4391_v20 = vld [vmem:[#allocation5 + $0x18c] ss:$16 sps:$4 sm:$0xff]  }
 0x348   :  { %3109 = vmatpush1.bf16.msra.mxu1 %v4302_v40  ;;  %v4389_v40 = vld [vmem:[#allocation5 + $0x188] ss:$16 sps:$4 sm:$0xff]  }
 0x349   :  { %3110 = vmatprep.subr.bf16.mxu1 %v4307_v16  ;;  %v4394_v16 = vld [vmem:[#allocation5 + $0x1ac] ss:$16 sps:$4 sm:$0xff]  }
 0x34c   :  { %3111 = vmatpush1.bf16.msra.mxu1 %v4305_v21  ;;  %v4392_v21 = vld [vmem:[#allocation5 + $0x1a8] ss:$16 sps:$4 sm:$0xff]  }
 0x34d   :  { %3112 = vmatprep.subr.bf16.mxu1 %v4310_v22  ;;  %v4397_v22 = vld [vmem:[#allocation5 + $0x1cc] ss:$16 sps:$4 sm:$0xff]  }
 0x350   :  { %3113 = vmatpush1.bf16.msra.mxu1 %v4308_v24  ;;  %v4395_v24 = vld [vmem:[#allocation5 + $0x1c8] ss:$16 sps:$4 sm:$0xff]  }
 0x351   :  { %3114 = vmatprep.subr.bf16.mxu1 %v4313_v29  ;;  %v4400_v29 = vld [vmem:[#allocation5 + $0x1ec] ss:$16 sps:$4 sm:$0xff]  }
 0x354   :  { %3115 = vmatpush1.bf16.msra.mxu1 %v4311_v39  ;;  %v4398_v39 = vld [vmem:[#allocation5 + $0x1e8] ss:$16 sps:$4 sm:$0xff]  }
 0x355   :  { %3116 = vmatprep.subr.bf16.mxu1 %v4316_v42  ;;  %v4403_v42 = vld [vmem:[#allocation5 + $0x20c] ss:$16 sps:$4 sm:$0xff]  }
 0x358   :  { %3117 = vmatpush1.bf16.msra.mxu1 %v4314_v28  ;;  %v4401_v28 = vld [vmem:[#allocation5 + $0x208] ss:$16 sps:$4 sm:$0xff]  }
 0x359   :  { %3118 = vmatprep.subr.bf16.mxu1 %v4319_v33  ;;  %v4406_v33 = vld [vmem:[#allocation5 + $0x22c] ss:$16 sps:$4 sm:$0xff]  }
 0x35c   :  { %3119 = vmatpush1.bf16.msra.mxu1 %v4317_v57  ;;  %v4404_v57 = vld [vmem:[#allocation5 + $0x228] ss:$16 sps:$4 sm:$0xff]  }
 0x35d   :  { %3120 = vmatprep.subr.bf16.mxu1 %v4322_v34  ;;  %v4409_v34 = vld [vmem:[#allocation5 + $0x24c] ss:$16 sps:$4 sm:$0xff]  }
 0x360   :  { %3121 = vmatpush1.bf16.msra.mxu1 %v4320_v47  ;;  %v4407_v47 = vld [vmem:[#allocation5 + $0x248] ss:$16 sps:$4 sm:$0xff]  }
 0x361   :  { %3122 = vmatprep.subr.bf16.mxu1 %v4325_v36  ;;  %v4412_v36 = vld [vmem:[#allocation5 + $0x26c] ss:$16 sps:$4 sm:$0xff]  }
 0x364   :  { %3123 = vmatpush1.bf16.msra.mxu1 %v4323_v7  ;;  %v4410_v7 = vld [vmem:[#allocation5 + $0x268] ss:$16 sps:$4 sm:$0xff]  }
 0x365   :  { %3124 = vmatprep.subr.bf16.mxu1 %v4328_v2  ;;  %v4415_v2 = vld [vmem:[#allocation5 + $0x28c] ss:$16 sps:$4 sm:$0xff]  }
 0x368   :  { %3125 = vmatpush1.bf16.msra.mxu1 %v4326_v17  ;;  %v4418_v17 = vld [vmem:[#allocation5 + $0x2ac] ss:$16 sps:$4 sm:$0xff]  }
 0x369   :  { %3145 = vmatprep.subr.bf16.mxu1 %v4331_v45  ;;  %v4416_v45 = vld [vmem:[#allocation5 + $0x2a8] ss:$16 sps:$4 sm:$0xff]  }
 0x36b   :  { %3127 = vmatmul.mubr.bf16.vlgmr.msra.gmra.mrb[0].mxu1 %v4743_v25 }
 0x36c   :  { %3136 = vmatprep.mubr.bf16.mxu1 %v4843_v52  ;;  %3146 = vmatpush1.bf16.msra.mxu1 %v4329_v46  ;;  %v4421_v46 = vld [vmem:[#allocation5 + $0x2cc] ss:$16 sps:$4 sm:$0xff]  }
 0x36d   :  { %3147 = vmatprep.subr.bf16.mxu1 %v4334_v49  ;;  %v4419_v49 = vld [vmem:[#allocation5 + $0x2c8] ss:$16 sps:$4 sm:$0xff]  }
 0x370   :  { %3148 = vmatpush1.bf16.msra.mxu1 %v4332_v53  ;;  %v4422_v53 = vld [vmem:[#allocation5 + $0x2e8] ss:$16 sps:$4 sm:$0xff]  }
 0x371   :  { %3149 = vmatprep.subr.bf16.mxu1 %v4337_v54 }
 0x373   :  { %3137 = vmatmul.mubr.bf16.gmra.mrb[4].mxu1 %v4849_v56 }
 0x374   :  { %3150 = vmatpush1.bf16.msra.mxu1 %v4335_v41  ;;  %3177 = vmatprep.mubr.bf16.mxu1 %v4520_v6 }
 0x375   :  { %3151 = vmatprep.subr.bf16.mxu1 %v4340_v31 }
 0x378   :  { %3152 = vmatpush1.bf16.msra.mxu1 %v4338_v63 }
 0x379   :  { %3153 = vmatprep.subr.bf16.mxu1 %v4343_v58 }
 0x37c   :  { %3154 = vmatpush1.bf16.msra.mxu1 %v4341_v61 }
 0x37d   :  { %3155 = vmatprep.subr.bf16.mxu1 %v4346_v43 }
 0x380   :  { %3156 = vmatpush1.bf16.msra.mxu1 %v4344_v62 }
 0x381   :  { %3157 = vmatprep.subr.bf16.mxu1 %v4349_v35 }
 0x384   :  { %3158 = vmatpush1.bf16.msra.mxu1 %v4347_v50 }
 0x385   :  { %3159 = vmatprep.subr.bf16.mxu1 %v4352_v26 }
 0x388   :  { %3160 = vmatpush1.bf16.msra.mxu1 %v4350_v38 }
 0x389   :  { %3196 = vmatprep.subr.bf16.mxu1 %v4355_v0 }
 0x38b   :  { %3178 = vmatmul.mubr.bf16.vlgmr.msra.gmra.mrb[0].mxu1 %v4804_v23 }
 0x38c   :  { %3197 = vmatpush1.bf16.msra.mxu1 %v4353_v1  ;;  %3187 = vmatprep.mubr.bf16.mxu1 %v4520_v6 }
 0x38d   :  { %3198 = vmatprep.subr.bf16.mxu1 %v4358_v27 }
 0x390   :  { %3199 = vmatpush1.bf16.msra.mxu1 %v4356_v4 }
 0x391   :  { %3200 = vmatprep.subr.bf16.mxu1 %v4361_v5 }
 0x393   :  { %3188 = vmatmul.mubr.bf16.gmra.mrb[4].mxu1 %v4857_v60 }
 0x394   :  { %3201 = vmatpush1.bf16.msra.mxu1 %v4359_v48  ;;  %3228 = vmatprep.mubr.bf16.mxu1 %v4802_v59  ;;  %v4377_v59 = vld [vmem:[#allocation5 + $0x108] ss:$16 sps:$4 sm:$0xff]  }
 0x395   :  { %3202 = vmatprep.subr.bf16.mxu1 %v4364_v37 }
 0x398   :  { %3203 = vmatpush1.bf16.msra.mxu1 %v4362_v55 }
 0x399   :  { %3204 = vmatprep.subr.bf16.mxu1 %v4367_v8 }
 0x39c   :  { %3205 = vmatpush1.bf16.msra.mxu1 %v4365_v9 }
 0x39d   :  { %3206 = vmatprep.subr.bf16.mxu1 %v4370_v10 }
 0x3a0   :  { %3207 = vmatpush1.bf16.msra.mxu1 %v4368_v30 }
 0x3a1   :  { %3208 = vmatprep.subr.bf16.mxu1 %v4373_v11 }
 0x3a4   :  { %3209 = vmatpush1.bf16.msra.mxu1 %v4371_v3 }
 0x3a5   :  { %3210 = vmatprep.subr.bf16.mxu1 %v4376_v44 }
 0x3a8   :  { %3211 = vmatpush1.bf16.msra.mxu1 %v4374_v12 }
 0x3a9   :  { %3212 = vmatprep.subr.bf16.mxu1 %v4379_v13 }
 0x3ac   :  { %3213 = vmatpush1.bf16.msra.mxu1 %v4377_v59 }
 0x3ad   :  { %3214 = vmatprep.subr.bf16.mxu1 %v4382_v14 }
 0x3b0   :  { %3215 = vmatpush1.bf16.msra.mxu1 %v4380_v32 }
 0x3b1   :  { %3216 = vmatprep.subr.bf16.mxu1 %v4385_v15 }
 0x3b4   :  { %3217 = vmatpush1.bf16.msra.mxu1 %v4383_v18  ;;  %v3298_v18 = vld [vmem:[%s4909_s6] sm:$0xff] }
 0x3b5   :  { %3218 = vmatprep.subr.bf16.mxu1 %v4388_v19 }
 0x3b8   :  { %3219 = vmatpush1.bf16.msra.mxu1 %v4386_v51 }
 0x3b9   :  { %3220 = vmatprep.subr.bf16.mxu1 %v4391_v20 }
 0x3bc   :  { %3221 = vmatpush1.bf16.msra.mxu1 %v4389_v40 }
 0x3bd   :  { %3222 = vmatprep.subr.bf16.mxu1 %v4394_v16 }
 0x3c0   :  { %3223 = vmatpush1.bf16.msra.mxu1 %v4392_v21 }
 0x3c1   :  { %3224 = vmatprep.subr.bf16.mxu1 %v4397_v22 }
 0x3c4   :  { %3225 = vmatpush1.bf16.msra.mxu1 %v4395_v24 }
 0x3c5   :  { %3226 = vmatprep.subr.bf16.mxu1 %v4400_v29 }
 0x3c8   :  { %3227 = vmatpush1.bf16.msra.mxu1 %v4398_v39 }
 0x3c9   :  { %3247 = vmatprep.subr.bf16.mxu1 %v4403_v42 }
 0x3cb   :  { %3229 = vmatmul.mubr.bf16.vlgmr.msra.gmra.mrb[8].mxu1 %v4743_v25  ;;  %v4413_v25 = vld [vmem:[#allocation5 + $0x288] ss:$16 sps:$4 sm:$0xff]  }
 0x3cc   :  { %3238 = vmatprep.mubr.bf16.mxu1 %v4843_v52  ;;  %3248 = vmatpush1.bf16.msra.mxu1 %v4401_v28  ;;  %v4424_v52 = vld [vmem:[#allocation5 + $0x2ec] ss:$16 sps:$4 sm:$0xff]   ;;  %v3299_v28 = vld [vmem:[%s4909_s6 + $0x8] sm:$0xf] }
 0x3cd   :  { %3249 = vmatprep.subr.bf16.mxu1 %v4406_v33 }
 0x3d0   :  { %3250 = vmatpush1.bf16.msra.mxu1 %v4404_v57 }
 0x3d1   :  { %3251 = vmatprep.subr.bf16.mxu1 %v4409_v34 }
 0x3d3   :  { %3239 = vmatmul.mubr.bf16.gmra.mrb[12].mxu1 %v4849_v56 }
 0x3d4   :  { %3252 = vmatpush1.bf16.msra.mxu1 %v4407_v47  ;;  %3279 = vmatprep.mubr.bf16.mxu1 %v4520_v6 }
 0x3d5   :  { %3253 = vmatprep.subr.bf16.mxu1 %v4412_v36 }
 0x3d8   :  { %3254 = vmatpush1.bf16.msra.mxu1 %v4410_v7 }
 0x3d9   :  { %3255 = vmatprep.subr.bf16.mxu1 %v4415_v2 }
 0x3dc   :  { %3256 = vmatpush1.bf16.msra.mxu1 %v4413_v25 }
 0x3dd   :  { %3257 = vmatprep.subr.bf16.mxu1 %v4418_v17 }
 0x3e0   :  { %3258 = vmatpush1.bf16.msra.mxu1 %v4416_v45 }
 0x3e1   :  { %3259 = vmatprep.subr.bf16.mxu1 %v4421_v46 }
 0x3e4   :  { %3260 = vmatpush1.bf16.msra.mxu1 %v4419_v49 }
 0x3e5   :  { %3261 = vmatprep.subr.bf16.mxu1 %v4424_v52 }
 0x3e8   :  { %3262 = vmatpush1.bf16.msra.mxu1 %v4422_v53 }
 0x3eb   :  { %3280 = vmatmul.mubr.bf16.vlgmr.msra.gmra.mrb[8].mxu1 %v4804_v23 }
 0x3ec   :  { %3289 = vmatprep.mubr.bf16.mxu1 %v4520_v6 }
 0x3f3   :  { %3290 = vmatmul.mubr.bf16.gmra.mrb[12].mxu1 %v4857_v60 }
 0x45e   :  { %v3179_v54 = vpop.f32.mrb[0].mxu1 }
 0x45f   :  { %v3181_v41 = vpop.f32.mrb[1].mxu1 }
 0x460   :  { %v3304_v56 = vrot.slane %v3181_v41, 7  ;;  %v3183_v31 = vpop.f32.mrb[2].mxu1 }
 0x461   :  { %v3185_v63 = vpop.f32.mrb[3].mxu1  ;;  %v3301_v35 = vsel %vm3300_vm12, %v3183_v31, 0.0  ;;  %v3343_v26 = vrot.slane %v3183_v31, 1 }
 0x462   :  { %v3309_v58 = vsel %vm3300_vm12, 0.0, %v3304_v56  ;;  %v3305_v61 = vrot.slane %v3185_v63, 7  ;;  %v3349_v4 = vsel %vm3300_vm12, 0.0, %v3185_v63 }
 0x463   :  { %v3312_v43 = vadd.f32 %v3309_v58, %v3179_v54 }
 0x464   :  { %v3306_v62 = vsel %vm3300_vm12, %v3304_v56, %v3305_v61 }
 0x465   :  { %v3311_v23 = vsel %vm3310_vm13, %v3306_v62, 0.0 }
 0x466   :  { %v3313_v6 = vadd.f32 %v3311_v23, %v3301_v35  ;;  %v3189_v50 = vpop.f32.mrb[4].mxu1 }
 0x467   :  { %v3344_v38 = vrot.slane %v3189_v50, 1  ;;  %v3191_v0 = vpop.f32.mrb[5].mxu1 }
 0x468   :  { %v3350_v1 = vsel %vm3310_vm13, %v3191_v0, 0.0  ;;  %v3193_v27 = vpop.f32.mrb[6].mxu1 }
 0x469   :  { %v3345_v5 = vsel %vm3342_vm14, %v3343_v26, %v3344_v38  ;;  %v3348_v48 = vsel %vm3300_vm12, %v3344_v38, 0.0  ;;  %v3194_v60 = vpop.f32.mrb[7].mxu1 }
 0x46a   :  { %v3351_v37 = vadd.f32 %v3349_v4, %v3345_v5  ;;  %v3352_v55 = vadd.f32 %v3350_v1, %v3348_v48 }
 0x4be   :  { %v3281_v8 = vpop.f32.mrb[8].mxu1 }
 0x4bf   :  { %v3316_v9 = vrot.slane %v3281_v8, 6  ;;  %v3283_v10 = vpop.f32.mrb[9].mxu1 }
 0x4c0   :  { %v3328_v30 = vrot.slane %v3283_v10, 5  ;;  %v3285_v11 = vpop.f32.mrb[10].mxu1 }
 0x4c1   :  { %v3321_v3 = vsel %vm3310_vm13, 0.0, %v3316_v9  ;;  %v3317_v44 = vrot.slane %v3285_v11, 6  ;;  %v3354_v12 = vrot.slane %v3285_v11, 7  ;;  %v3287_v13 = vpop.f32.mrb[11].mxu1 }
 0x4c2   :  { %v3324_v59 = vadd.f32 %v3321_v3, %v3312_v43  ;;  %v3333_v14 = vsel %vm3322_vm15, 0.0, %v3328_v30  ;;  %v3329_v32 = vrot.slane %v3287_v13, 5  ;;  %v3364_v15 = vrot.slane %v3287_v13, 6 }
 0x4c3   :  { %v3318_v19 = vsel %vm3310_vm13, %v3316_v9, %v3317_v44  ;;  %v3359_v51 = vsel %vm3310_vm13, 0.0, %v3354_v12 }
 0x4c4   :  { %v3334_v20 = vadd.f32 %v3333_v14, %v3324_v59  ;;  %v3323_v40 = vsel %vm3322_vm15, %v3318_v19, 0.0  ;;  %v3361_v16 = vadd.f32 %v3359_v51, %v3351_v37  ;;  %v3330_v21 = vsel %vm3322_vm15, %v3328_v30, %v3329_v32 }
 0x4c5   :  { %v3325_v22 = vadd.f32 %v3323_v40, %v3313_v6  ;;  %v3369_v24 = vsel %vm3322_vm15, 0.0, %v3364_v15 }
 0x4c6   :  { %v3336_v29 = vmul.f32 %v3334_v20, %v3298_v18  ;;  %v3370_v39 = vadd.f32 %v3369_v24, %v3361_v16  ;;  %v3291_v42 = vpop.f32.mrb[12].mxu1 }
 0x4c7   :  { %v3335_v33 = vadd.f32 %v3330_v21, %v3325_v22  ;;  %v3355_v57 = vrot.slane %v3291_v42, 7  ;;  %v3293_v34 = vpop.f32.mrb[13].mxu1 }
 0x4c8   :  { %3338 = vst [vmem:[%s4910_s7] sm:$0xff] %v3336_v29  ;;  %v3372_v47 = vmul.f32 %v3370_v39, %v3298_v18  ;;  %v3365_v36 = vrot.slane %v3293_v34, 6  ;;  %v3295_v7 = vpop.f32.mrb[14].mxu1 }
 0x4c9   :  { %v3356_v2 = vsel %vm3300_vm12, %v3354_v12, %v3355_v57  ;;  %v3337_v25 = vmul.f32 %v3335_v33, %v3299_v28  ;;  %v3296_v17 = vpop.f32.mrb[15].mxu1 }
 0x4ca   :  { %3767 = vst [vmem:[%s4910_s7 + $0x10] sm:$0xff] %v3372_v47  ;;  %v3360_v45 = vsel %vm3322_vm15, %v3356_v2, 0.0  ;;  %v3366_v46 = vsel %vm3310_vm13, %v3364_v15, %v3365_v36 }
 0x4cb   :  { %v3362_v49 = vadd.f32 %v3360_v45, %v3352_v55  ;;  %3339 = vst [vmem:[%s4910_s7 + $0x8] sm:$0xf] %v3337_v25 }
 0x4cd   :  { %v3371_v52 = vadd.f32 %v3366_v46, %v3362_v49 }
 0x4cf   :  { %v3373_v53 = vmul.f32 %v3371_v52, %v3299_v28 }
 0x4d1   :  { %3768 = vst [vmem:[%s4910_s7 + $0x18] sm:$0xf] %v3373_v53 }
 0x4d2   :  { %3381 = vsyncpa [#allocation4], 1 }
 0x4d3   :  { %3382 = vsyncpa [#allocation6], 1 }

</bundles_post_ra>
